<compile_context>
chip_gen: v6e
topology: v6e:2x2x1
jax: 0.10.0
libtpu: 0.0.40
codegen_flags: <defaults>
</compile_context>

<pallas_src>
import functools

import jax
import jax.numpy as jnp
from jax.experimental import pallas as pl
from jax.experimental.pallas import tpu as pltpu


def _transformer_kernel(x_ref, w_emb_ref, b_emb_ref, w_qkv_ref, b_qkv_ref,
                        w_o_ref, b_o_ref, w_fc_ref, b_fc_ref, out_ref,
                        *, num_heads, head_dim, batch, seq_len):
    H, hd, B, L = num_heads, head_dim, batch, seq_len
    E = H * hd

    x = x_ref[...]                                            # (p*p, B*L), tokens on lanes

    # Patch embedding: (E, P2) @ (P2, B*L) -> (E, B*L).
    emb = jnp.dot(w_emb_ref[...], x, preferred_element_type=jnp.float32) + b_emb_ref[...]
    # Fused Q/K/V projection: (3E, E) @ (E, B*L) -> (3E, B*L).
    qkv = jnp.dot(w_qkv_ref[...], emb, preferred_element_type=jnp.float32) + b_qkv_ref[...]

    # Columns [b*L, (b+1)*L) belong to batch element b (L is a multiple of 128 here,
    # so these lane slices are 128-aligned).
    def split_b(a):                                           # (E, B*L) -> [B x (E, L)]
        return [a[:, b * L:(b + 1) * L] for b in range(B)]

    q = split_b(qkv[0 * E:1 * E, :])
    k = split_b(qkv[1 * E:2 * E, :])
    v3 = [vb.reshape(H, hd, L) for vb in split_b(qkv[2 * E:3 * E, :])]

    # NOTE: the torch module scales by 1/sqrt(embed_dim), not 1/sqrt(head_dim).
    scale = 1.0 / (float(E) ** 0.5)

    def head_scores(qi, kj):
        # Per-head dot over head_dim on the VPU: elementwise mul + sublane reduce
        # within each head's hd rows.  (E, L) -> (H, L).
        prod = (qi * kj).reshape(H, hd, L)
        return jnp.sum(prod, axis=1) * scale

    # Attention over the (tiny) batch axis, per token column, fully on the VPU/EUP.
    s = [[head_scores(q[i], k[j]) for j in range(B)] for i in range(B)]

    inv_l = 1.0 / float(L)
    pooled_cols = []
    for i in range(B):
        m = s[i][0]
        for j in range(1, B):
            m = jnp.maximum(m, s[i][j])
        p = [jnp.exp(s[i][j] - m) for j in range(B)]
        denom = p[0]
        for j in range(1, B):
            denom = denom + p[j]
        r = pl.reciprocal(denom, approx=False)                # (H, L)
        o_i = None
        for j in range(B):
            contrib = (p[j] * r)[:, None, :] * v3[j]          # (H, hd, L)
            o_i = contrib if o_i is None else o_i + contrib
        # Mean-pool over L (the linear output projection commutes with the mean,
        # so W_o / W_fc are applied after pooling).
        pooled_cols.append(jnp.sum(o_i.reshape(E, L), axis=1, keepdims=True) * inv_l)

    pooled = jnp.concatenate(pooled_cols, axis=1)             # (E, B)
    y = jnp.dot(w_o_ref[...], pooled, preferred_element_type=jnp.float32) + b_o_ref[...]
    logits = jnp.dot(w_fc_ref[...], y, preferred_element_type=jnp.float32) + b_fc_ref[...]
    out_ref[...] = logits.astype(out_ref.dtype)               # (num_classes, B)


def simple_transformer_forward(x, params, *, patch_size, num_heads):
    B, C, H, W = x.shape
    p = patch_size
    assert H % p == 0 and W % p == 0
    P2 = p * p
    L = C * (H // p) * (W // p)
    E = params["w_emb"].shape[1]
    num_classes = params["w_fc"].shape[1]
    assert E % num_heads == 0
    head_dim = E // num_heads

    # torch unfold(2,p,p).unfold(3,p,p).contiguous().view(B, -1, p*p)
    patches = x.reshape(B, C, H // p, p, W // p, p)
    patches = patches.transpose(0, 1, 2, 4, 3, 5)
    patches = patches.reshape(B, L, P2)
    # Lane-dense token layout: (P2, B*L), columns ordered b-major / l-minor so each batch
    # element's L tokens occupy a contiguous (128-aligned for these sizes) lane range.
    x_t = jnp.transpose(patches, (2, 0, 1)).reshape(P2, B * L)

    # Pre-packed / transposed weights: every in-kernel matmul is
    # (features x features) @ (features x tokens), keeping tokens on lanes.
    w_emb_t = params["w_emb"].T                               # (E, P2)
    b_emb_c = params["b_emb"].reshape(E, 1)
    w_qkv_t = jnp.concatenate(
        [params["w_q"].T, params["w_k"].T, params["w_v"].T], axis=0)        # (3E, E)
    b_qkv_c = jnp.concatenate(
        [params["b_q"], params["b_k"], params["b_v"]], axis=1).reshape(3 * E, 1)
    w_o_t = params["w_o"].T                                   # (E, E)
    b_o_c = params["b_o"].reshape(E, 1)
    w_fc_t = params["w_fc"].T                                 # (num_classes, E)
    b_fc_c = params["b_fc"].reshape(num_classes, 1)

    operands = (x_t, w_emb_t, b_emb_c, w_qkv_t, b_qkv_c, w_o_t, b_o_c, w_fc_t, b_fc_c)

    kernel = functools.partial(_transformer_kernel, num_heads=num_heads,
                               head_dim=head_dim, batch=B, seq_len=L)

    def full_spec(a):
        return pl.BlockSpec(a.shape, lambda i: (0,) * a.ndim)

    logits_t = pl.pallas_call(
        kernel,
        out_shape=jax.ShapeDtypeStruct((num_classes, B), jnp.float32),
        grid_spec=pltpu.PrefetchScalarGridSpec(
            num_scalar_prefetch=0,
            grid=(1,),                                        # single step: all resident in VMEM
            in_specs=[full_spec(a) for a in operands],
            out_specs=pl.BlockSpec((num_classes, B), lambda i: (0, 0)),
        ),
        compiler_params=pltpu.CompilerParams(dimension_semantics=("arbitrary",)),
    )(*operands)
    return logits_t.T                                         # (B, num_classes)


def reference_forward(x, params, *, patch_size, num_heads):
    """Pure-JAX mirror of the PyTorch forward (for correctness check)."""
    B, C, H, W = x.shape
    p = patch_size
    patches = x.reshape(B, C, H // p, p, W // p, p).transpose(0, 1, 2, 4, 3, 5)
    patches = patches.reshape(B, -1, p * p)
    emb = patches @ params["w_emb"] + params["b_emb"]          # (B, L, E)
    xT = jnp.transpose(emb, (1, 0, 2))                         # (L, B, E)
    L, Bv, E = xT.shape
    hd = E // num_heads

    def lin(a, w, b):
        return a @ w + b

    q = lin(xT, params["w_q"], params["b_q"]).reshape(L, Bv, num_heads, hd).transpose(0, 2, 1, 3)
    k = lin(xT, params["w_k"], params["b_k"]).reshape(L, Bv, num_heads, hd).transpose(0, 2, 1, 3)
    v = lin(xT, params["w_v"], params["b_v"]).reshape(L, Bv, num_heads, hd).transpose(0, 2, 1, 3)
    energy = jnp.einsum("lhqd,lhkd->lhqk", q, k)
    attn = jax.nn.softmax(energy / (float(E) ** 0.5), axis=-1)
    out = jnp.einsum("lhqk,lhkd->lhqd", attn, v).transpose(0, 2, 1, 3).reshape(L, Bv, E)
    out = out @ params["w_o"] + params["b_o"]
    pooled = jnp.transpose(out, (1, 0, 2)).mean(axis=1)        # (B, E)
    return pooled @ params["w_fc"] + params["b_fc"]


def init_params(key, *, patch_size, embed_dim, num_heads, num_classes):
    ks = jax.random.split(key, 12)
    P2 = patch_size * patch_size
    s = 0.1
    return {
        "w_emb": s * jax.random.normal(ks[0], (P2, embed_dim), jnp.float32),
        "b_emb": s * jax.random.normal(ks[1], (1, embed_dim), jnp.float32),
        "w_q":   s * jax.random.normal(ks[2], (embed_dim, embed_dim), jnp.float32),
        "b_q":   s * jax.random.normal(ks[3], (1, embed_dim), jnp.float32),
        "w_k":   s * jax.random.normal(ks[4], (embed_dim, embed_dim), jnp.float32),
        "b_k":   s * jax.random.normal(ks[5], (1, embed_dim), jnp.float32),
        "w_v":   s * jax.random.normal(ks[6], (embed_dim, embed_dim), jnp.float32),
        "b_v":   s * jax.random.normal(ks[7], (1, embed_dim), jnp.float32),
        "w_o":   s * jax.random.normal(ks[8], (embed_dim, embed_dim), jnp.float32),
        "b_o":   s * jax.random.normal(ks[9], (1, embed_dim), jnp.float32),
        "w_fc":  s * jax.random.normal(ks[10], (embed_dim, num_classes), jnp.float32),
        "b_fc":  s * jax.random.normal(ks[11], (1, num_classes), jnp.float32),
    }


if __name__ == "__main__":
    PATCH = 2
    EMBED = 32
    HEADS = 4
    CLASSES = 10

    key = jax.random.PRNGKey(0)
    kx, kp = jax.random.split(key)
    x = jax.random.normal(kx, (2, 4, 16, 16), jnp.float32)   # (B, C, H, W), NCHW
    params = init_params(kp, patch_size=PATCH, embed_dim=EMBED,
                         num_heads=HEADS, num_classes=CLASSES)

    out = simple_transformer_forward(x, params, patch_size=PATCH, num_heads=HEADS)
    out = jax.block_until_ready(out)

    ref = reference_forward(x, params, patch_size=PATCH, num_heads=HEADS)
    assert out.shape == (2, CLASSES)
    assert jnp.allclose(out, ref, rtol=1e-4, atol=1e-4), (out, ref)

    print("KERNEL_OK")
</pallas_src>

<mosaic_0001>
module attributes {stable_mosaic.version = 11 : i64} {
  func.func @_transformer_kernel(%arg0: i32, %arg1: memref<4x512xf32, #tpu.memory_space<vmem>>, %arg2: memref<32x4xf32, #tpu.memory_space<vmem>>, %arg3: memref<32x1xf32, #tpu.memory_space<vmem>>, %arg4: memref<96x32xf32, #tpu.memory_space<vmem>>, %arg5: memref<96x1xf32, #tpu.memory_space<vmem>>, %arg6: memref<32x32xf32, #tpu.memory_space<vmem>>, %arg7: memref<32x1xf32, #tpu.memory_space<vmem>>, %arg8: memref<10x32xf32, #tpu.memory_space<vmem>>, %arg9: memref<10x1xf32, #tpu.memory_space<vmem>>, %arg10: memref<10x2xf32, #tpu.memory_space<vmem>>) attributes {dimension_semantics = [#tpu.dimension_semantics<arbitrary>], iteration_bounds = array<i64: 1>, scalar_prefetch = 0 : i64, scratch_operands = 0 : i64, tpu.core_type = #tpu.core_type<tc>, window_params = [{pipeline_mode = #tpu.pipeline_mode<synchronous>, transform_indices = @transform_0, window_bounds = array<i64: 4, 512>}, {pipeline_mode = #tpu.pipeline_mode<synchronous>, transform_indices = @transform_1, window_bounds = array<i64: 32, 4>}, {pipeline_mode = #tpu.pipeline_mode<synchronous>, transform_indices = @transform_2, window_bounds = array<i64: 32, 1>}, {pipeline_mode = #tpu.pipeline_mode<synchronous>, transform_indices = @transform_3, window_bounds = array<i64: 96, 32>}, {pipeline_mode = #tpu.pipeline_mode<synchronous>, transform_indices = @transform_4, window_bounds = array<i64: 96, 1>}, {pipeline_mode = #tpu.pipeline_mode<synchronous>, transform_indices = @transform_5, window_bounds = array<i64: 32, 32>}, {pipeline_mode = #tpu.pipeline_mode<synchronous>, transform_indices = @transform_6, window_bounds = array<i64: 32, 1>}, {pipeline_mode = #tpu.pipeline_mode<synchronous>, transform_indices = @transform_7, window_bounds = array<i64: 10, 32>}, {pipeline_mode = #tpu.pipeline_mode<synchronous>, transform_indices = @transform_8, window_bounds = array<i64: 10, 1>}, {pipeline_mode = #tpu.pipeline_mode<synchronous>, transform_indices = @transform_9, window_bounds = array<i64: 10, 2>}]} {
    %c0 = arith.constant 0 : index
    %c0_0 = arith.constant 0 : index
    %0 = vector.load %arg1[%c0, %c0_0] : memref<4x512xf32, #tpu.memory_space<vmem>>, vector<4x512xf32>
    %c0_1 = arith.constant 0 : index
    %c0_2 = arith.constant 0 : index
    %1 = vector.load %arg2[%c0_1, %c0_2] : memref<32x4xf32, #tpu.memory_space<vmem>>, vector<32x4xf32>
    %cst = arith.constant dense<0.000000e+00> : vector<32x512xf32>
    %2 = tpu.matmul %1, %0, %cst {dimension_numbers = #tpu.dot_dimension_numbers<[1], [0], [0], [1], [0, 0, 1, 1], [], []>} : vector<32x4xf32>, vector<4x512xf32>, vector<32x512xf32> -> vector<32x512xf32>
    %c0_3 = arith.constant 0 : index
    %c0_4 = arith.constant 0 : index
    %3 = vector.load %arg3[%c0_3, %c0_4] : memref<32x1xf32, #tpu.memory_space<vmem>>, vector<32x1xf32>
    %4 = vector.broadcast %3 : vector<32x1xf32> to vector<32x512xf32>
    %5 = arith.addf %2, %4 : vector<32x512xf32>
    %c0_5 = arith.constant 0 : index
    %c0_6 = arith.constant 0 : index
    %6 = vector.load %arg4[%c0_5, %c0_6] : memref<96x32xf32, #tpu.memory_space<vmem>>, vector<96x32xf32>
    %cst_7 = arith.constant dense<0.000000e+00> : vector<96x512xf32>
    %7 = tpu.matmul %6, %5, %cst_7 {dimension_numbers = #tpu.dot_dimension_numbers<[1], [0], [0], [1], [0, 0, 1, 1], [], []>} : vector<96x32xf32>, vector<32x512xf32>, vector<96x512xf32> -> vector<96x512xf32>
    %c0_8 = arith.constant 0 : index
    %c0_9 = arith.constant 0 : index
    %8 = vector.load %arg5[%c0_8, %c0_9] : memref<96x1xf32, #tpu.memory_space<vmem>>, vector<96x1xf32>
    %9 = vector.broadcast %8 : vector<96x1xf32> to vector<96x512xf32>
    %10 = arith.addf %7, %9 : vector<96x512xf32>
    %11 = vector.extract_strided_slice %10 {offsets = [0, 0], sizes = [32, 512], strides = [1, 1]} : vector<96x512xf32> to vector<32x512xf32>
    %12 = vector.extract_strided_slice %11 {offsets = [0, 0], sizes = [32, 256], strides = [1, 1]} : vector<32x512xf32> to vector<32x256xf32>
    %13 = vector.extract_strided_slice %11 {offsets = [0, 256], sizes = [32, 256], strides = [1, 1]} : vector<32x512xf32> to vector<32x256xf32>
    %14 = vector.extract_strided_slice %10 {offsets = [32, 0], sizes = [32, 512], strides = [1, 1]} : vector<96x512xf32> to vector<32x512xf32>
    %15 = vector.extract_strided_slice %14 {offsets = [0, 0], sizes = [32, 256], strides = [1, 1]} : vector<32x512xf32> to vector<32x256xf32>
    %16 = vector.extract_strided_slice %14 {offsets = [0, 256], sizes = [32, 256], strides = [1, 1]} : vector<32x512xf32> to vector<32x256xf32>
    %17 = vector.extract_strided_slice %10 {offsets = [64, 0], sizes = [32, 512], strides = [1, 1]} : vector<96x512xf32> to vector<32x512xf32>
    %18 = vector.extract_strided_slice %17 {offsets = [0, 0], sizes = [32, 256], strides = [1, 1]} : vector<32x512xf32> to vector<32x256xf32>
    %19 = vector.extract_strided_slice %17 {offsets = [0, 256], sizes = [32, 256], strides = [1, 1]} : vector<32x512xf32> to vector<32x256xf32>
    %20 = vector.shape_cast %18 : vector<32x256xf32> to vector<4x8x256xf32>
    %21 = vector.shape_cast %19 : vector<32x256xf32> to vector<4x8x256xf32>
    %22 = arith.mulf %12, %15 : vector<32x256xf32>
    %23 = vector.shape_cast %22 : vector<32x256xf32> to vector<4x8x256xf32>
    %cst_10 = arith.constant dense<0.000000e+00> : vector<4x256xf32>
    %24 = vector.multi_reduction <add>, %23, %cst_10 [1] : vector<4x8x256xf32> to vector<4x256xf32>
    %cst_11 = arith.constant 0.176776692 : f32
    %25 = vector.broadcast %cst_11 : f32 to vector<4x256xf32>
    %26 = arith.mulf %24, %25 : vector<4x256xf32>
    %27 = arith.mulf %12, %16 : vector<32x256xf32>
    %28 = vector.shape_cast %27 : vector<32x256xf32> to vector<4x8x256xf32>
    %cst_12 = arith.constant dense<0.000000e+00> : vector<4x256xf32>
    %29 = vector.multi_reduction <add>, %28, %cst_12 [1] : vector<4x8x256xf32> to vector<4x256xf32>
    %cst_13 = arith.constant 0.176776692 : f32
    %30 = vector.broadcast %cst_13 : f32 to vector<4x256xf32>
    %31 = arith.mulf %29, %30 : vector<4x256xf32>
    %32 = arith.mulf %13, %15 : vector<32x256xf32>
    %33 = vector.shape_cast %32 : vector<32x256xf32> to vector<4x8x256xf32>
    %cst_14 = arith.constant dense<0.000000e+00> : vector<4x256xf32>
    %34 = vector.multi_reduction <add>, %33, %cst_14 [1] : vector<4x8x256xf32> to vector<4x256xf32>
    %cst_15 = arith.constant 0.176776692 : f32
    %35 = vector.broadcast %cst_15 : f32 to vector<4x256xf32>
    %36 = arith.mulf %34, %35 : vector<4x256xf32>
    %37 = arith.mulf %13, %16 : vector<32x256xf32>
    %38 = vector.shape_cast %37 : vector<32x256xf32> to vector<4x8x256xf32>
    %cst_16 = arith.constant dense<0.000000e+00> : vector<4x256xf32>
    %39 = vector.multi_reduction <add>, %38, %cst_16 [1] : vector<4x8x256xf32> to vector<4x256xf32>
    %cst_17 = arith.constant 0.176776692 : f32
    %40 = vector.broadcast %cst_17 : f32 to vector<4x256xf32>
    %41 = arith.mulf %39, %40 : vector<4x256xf32>
    %42 = arith.maximumf %26, %31 : vector<4x256xf32>
    %43 = arith.subf %26, %42 : vector<4x256xf32>
    %44 = math.exp %43 : vector<4x256xf32>
    %45 = arith.subf %31, %42 : vector<4x256xf32>
    %46 = math.exp %45 : vector<4x256xf32>
    %47 = arith.addf %44, %46 : vector<4x256xf32>
    %48 = tpu.reciprocal %47 : vector<4x256xf32> -> vector<4x256xf32>
    %49 = arith.mulf %44, %48 : vector<4x256xf32>
    %50 = vector.shape_cast %49 : vector<4x256xf32> to vector<4x1x256xf32>
    %51 = vector.broadcast %50 : vector<4x1x256xf32> to vector<4x8x256xf32>
    %52 = arith.mulf %51, %20 : vector<4x8x256xf32>
    %53 = arith.mulf %46, %48 : vector<4x256xf32>
    %54 = vector.shape_cast %53 : vector<4x256xf32> to vector<4x1x256xf32>
    %55 = vector.broadcast %54 : vector<4x1x256xf32> to vector<4x8x256xf32>
    %56 = arith.mulf %55, %21 : vector<4x8x256xf32>
    %57 = arith.addf %52, %56 : vector<4x8x256xf32>
    %58 = vector.shape_cast %57 : vector<4x8x256xf32> to vector<32x256xf32>
    %cst_18 = arith.constant dense<0.000000e+00> : vector<32xf32>
    %59 = vector.multi_reduction <add>, %58, %cst_18 [1] : vector<32x256xf32> to vector<32xf32>
    %60 = vector.shape_cast %59 : vector<32xf32> to vector<32x1xf32>
    %cst_19 = arith.constant 3.906250e-03 : f32
    %61 = vector.broadcast %cst_19 : f32 to vector<32x1xf32>
    %62 = arith.mulf %60, %61 : vector<32x1xf32>
    %63 = arith.maximumf %36, %41 : vector<4x256xf32>
    %64 = arith.subf %36, %63 : vector<4x256xf32>
    %65 = math.exp %64 : vector<4x256xf32>
    %66 = arith.subf %41, %63 : vector<4x256xf32>
    %67 = math.exp %66 : vector<4x256xf32>
    %68 = arith.addf %65, %67 : vector<4x256xf32>
    %69 = tpu.reciprocal %68 : vector<4x256xf32> -> vector<4x256xf32>
    %70 = arith.mulf %65, %69 : vector<4x256xf32>
    %71 = vector.shape_cast %70 : vector<4x256xf32> to vector<4x1x256xf32>
    %72 = vector.broadcast %71 : vector<4x1x256xf32> to vector<4x8x256xf32>
    %73 = arith.mulf %72, %20 : vector<4x8x256xf32>
    %74 = arith.mulf %67, %69 : vector<4x256xf32>
    %75 = vector.shape_cast %74 : vector<4x256xf32> to vector<4x1x256xf32>
    %76 = vector.broadcast %75 : vector<4x1x256xf32> to vector<4x8x256xf32>
    %77 = arith.mulf %76, %21 : vector<4x8x256xf32>
    %78 = arith.addf %73, %77 : vector<4x8x256xf32>
    %79 = vector.shape_cast %78 : vector<4x8x256xf32> to vector<32x256xf32>
    %cst_20 = arith.constant dense<0.000000e+00> : vector<32xf32>
    %80 = vector.multi_reduction <add>, %79, %cst_20 [1] : vector<32x256xf32> to vector<32xf32>
    %81 = vector.shape_cast %80 : vector<32xf32> to vector<32x1xf32>
    %cst_21 = arith.constant 3.906250e-03 : f32
    %82 = vector.broadcast %cst_21 : f32 to vector<32x1xf32>
    %83 = arith.mulf %81, %82 : vector<32x1xf32>
    %84 = tpu.concatenate %62, %83 in 1 : vector<32x1xf32>, vector<32x1xf32> -> vector<32x2xf32>
    %c0_22 = arith.constant 0 : index
    %c0_23 = arith.constant 0 : index
    %85 = vector.load %arg6[%c0_22, %c0_23] : memref<32x32xf32, #tpu.memory_space<vmem>>, vector<32x32xf32>
    %cst_24 = arith.constant dense<0.000000e+00> : vector<32x2xf32>
    %86 = tpu.matmul %85, %84, %cst_24 {dimension_numbers = #tpu.dot_dimension_numbers<[1], [0], [0], [1], [0, 0, 1, 1], [], []>} : vector<32x32xf32>, vector<32x2xf32>, vector<32x2xf32> -> vector<32x2xf32>
    %c0_25 = arith.constant 0 : index
    %c0_26 = arith.constant 0 : index
    %87 = vector.load %arg7[%c0_25, %c0_26] : memref<32x1xf32, #tpu.memory_space<vmem>>, vector<32x1xf32>
    %88 = vector.broadcast %87 : vector<32x1xf32> to vector<32x2xf32>
    %89 = arith.addf %86, %88 : vector<32x2xf32>
    %c0_27 = arith.constant 0 : index
    %c0_28 = arith.constant 0 : index
    %90 = vector.load %arg8[%c0_27, %c0_28] : memref<10x32xf32, #tpu.memory_space<vmem>>, vector<10x32xf32>
    %cst_29 = arith.constant dense<0.000000e+00> : vector<10x2xf32>
    %91 = tpu.matmul %90, %89, %cst_29 {dimension_numbers = #tpu.dot_dimension_numbers<[1], [0], [0], [1], [0, 0, 1, 1], [], []>} : vector<10x32xf32>, vector<32x2xf32>, vector<10x2xf32> -> vector<10x2xf32>
    %c0_30 = arith.constant 0 : index
    %c0_31 = arith.constant 0 : index
    %92 = vector.load %arg9[%c0_30, %c0_31] : memref<10x1xf32, #tpu.memory_space<vmem>>, vector<10x1xf32>
    %93 = vector.broadcast %92 : vector<10x1xf32> to vector<10x2xf32>
    %94 = arith.addf %91, %93 : vector<10x2xf32>
    %c0_32 = arith.constant 0 : index
    %c0_33 = arith.constant 0 : index
    %95 = vector.load %arg10[%c0_32, %c0_33] : memref<10x2xf32, #tpu.memory_space<vmem>>, vector<10x2xf32>
    tpu.vector_store %arg10[%c0_32, %c0_33], %94 {strides = array<i32>} : memref<10x2xf32, #tpu.memory_space<vmem>>, vector<10x2xf32>,
    return
  }
  func.func @transform_0(%arg0: i32) -> (i32, i32) {
    %c0_i32 = arith.constant 0 : i32
    %c0_i32_0 = arith.constant 0 : i32
    %c0_i32_1 = arith.constant 0 : i32
    return %c0_i32, %c0_i32_0 : i32, i32
  }
  func.func @transform_1(%arg0: i32) -> (i32, i32) {
    %c0_i32 = arith.constant 0 : i32
    %c0_i32_0 = arith.constant 0 : i32
    %c0_i32_1 = arith.constant 0 : i32
    return %c0_i32, %c0_i32_0 : i32, i32
  }
  func.func @transform_2(%arg0: i32) -> (i32, i32) {
    %c0_i32 = arith.constant 0 : i32
    %c0_i32_0 = arith.constant 0 : i32
    %c0_i32_1 = arith.constant 0 : i32
    return %c0_i32, %c0_i32_0 : i32, i32
  }
  func.func @transform_3(%arg0: i32) -> (i32, i32) {
    %c0_i32 = arith.constant 0 : i32
    %c0_i32_0 = arith.constant 0 : i32
    %c0_i32_1 = arith.constant 0 : i32
    return %c0_i32, %c0_i32_0 : i32, i32
  }
  func.func @transform_4(%arg0: i32) -> (i32, i32) {
    %c0_i32 = arith.constant 0 : i32
    %c0_i32_0 = arith.constant 0 : i32
    %c0_i32_1 = arith.constant 0 : i32
    return %c0_i32, %c0_i32_0 : i32, i32
  }
  func.func @transform_5(%arg0: i32) -> (i32, i32) {
    %c0_i32 = arith.constant 0 : i32
    %c0_i32_0 = arith.constant 0 : i32
    %c0_i32_1 = arith.constant 0 : i32
    return %c0_i32, %c0_i32_0 : i32, i32
  }
  func.func @transform_6(%arg0: i32) -> (i32, i32) {
    %c0_i32 = arith.constant 0 : i32
    %c0_i32_0 = arith.constant 0 : i32
    %c0_i32_1 = arith.constant 0 : i32
    return %c0_i32, %c0_i32_0 : i32, i32
  }
  func.func @transform_7(%arg0: i32) -> (i32, i32) {
    %c0_i32 = arith.constant 0 : i32
    %c0_i32_0 = arith.constant 0 : i32
    %c0_i32_1 = arith.constant 0 : i32
    return %c0_i32, %c0_i32_0 : i32, i32
  }
  func.func @transform_8(%arg0: i32) -> (i32, i32) {
    %c0_i32 = arith.constant 0 : i32
    %c0_i32_0 = arith.constant 0 : i32
    %c0_i32_1 = arith.constant 0 : i32
    return %c0_i32, %c0_i32_0 : i32, i32
  }
  func.func @transform_9(%arg0: i32) -> (i32, i32) {
    %c0_i32 = arith.constant 0 : i32
    %c0_i32_0 = arith.constant 0 : i32
    %c0_i32_1 = arith.constant 0 : i32
    return %c0_i32, %c0_i32_0 : i32, i32
  }
}

</mosaic_0001>

<bundles_post_ra>
// kernel: tpu_custom_call.1
= control target key start
LH: loop header
LB: loop body
LE: loop exit
PB: predicated region body
PF: predicated region fallthrough
CT: control target
= control target key end

     0   :  { %vm79_vm0 = vcmask 1043456   ;;  %v1589_v2 = vmov 0.0   ;;  %v1590_v5 = vmov 0   ;;  %vm66_vm1 = vcmask 31744   ;;  %s2225_s0 = inlined_call_operand.vmem [shape: f32[4,512], index: 0, kind: input, shape index: {}]   ;;  %s2226_s1 = inlined_call_operand.vmem [shape: f32[32,4], index: 1, kind: input, shape index: {}]   ;;  %s2227_s2 = inlined_call_operand.vmem [shape: f32[32,1], index: 2, kind: input, shape index: {}]   ;;  %s2228_s4 = inlined_call_operand.vmem [shape: f32[96,1], index: 4, kind: input, shape index: {}]   ;;  %s2229_s3 = inlined_call_operand.vmem [shape: f32[96,32], index: 3, kind: input, shape index: {}]   ;;  %s2230_s6 = inlined_call_operand.vmem [shape: f32[32,1], index: 6, kind: input, shape index: {}]   ;;  %s2231_s5 = inlined_call_operand.vmem [shape: f32[32,32], index: 5, kind: input, shape index: {}]   ;;  %s2232_s8 = inlined_call_operand.vmem [shape: f32[10,1], index: 8, kind: input, shape index: {}]   ;;  %s2233_s7 = inlined_call_operand.vmem [shape: f32[10,32], index: 7, kind: input, shape index: {}]   ;;  %s2234_s9 = inlined_call_operand.vmem [shape: f32[10,2], index: 9, kind: output, shape index: {}]  }
   0x1   :  { %v32_v0 = vld [vmem:[%s2225_s0] sm:$0xff]  ;;  %v33_v1 = vld [vmem:[%s2225_s0 + $0x8] sm:$0xff]  ;;  %152 = vmatprep.mubr.f32.mxu0 %v1589_v2  ;;  %241 = vmatprep.mubr.f32.mxu1 %v1589_v2  ;;  %v41_v7 = vld [vmem:[%s2227_s2 + $0x18] sm:$0xff]  ;;  %vm350_vm2 = vcmask 261120   ;;  %vm1173_vm3 = vcmask 7168   ;;  %vm1400_vm4 = vcmask 9216  }
   0x2   :  { %v64_v3 = vcombine.high %v32_v0, %v32_v0  ;;  %v65_v4 = vcombine.high %v33_v1, %v33_v1  ;;  %1489 = vset.pattern.permute.xlu0 %v1590_v5  ;;  %1490 = vset.pattern.permute.xlu1 %v1590_v5  ;;  %v34_v6 = vld [vmem:[%s2226_s1] sm:$0xff]  ;;  %v39_v8 = vld [vmem:[%s2227_s2 + $0x8] sm:$0xff]  ;;  %v40_v10 = vld [vmem:[%s2227_s2 + $0x10] sm:$0xff]  ;;  %vm1398_vm5 = vcmask 15360  }
   0x3   :  { %v35_v9 = vld [vmem:[%s2226_s1 + $0x8] sm:$0xff]  ;;  %59 = vperm.xlu0 %1489, %v41_v7   ;;  %49 = vperm.xlu1 %1490, %v39_v8   ;;  %v38_v11 = vld [vmem:[%s2227_s2] sm:$0xff]  ;;  %v36_v12 = vld [vmem:[%s2226_s1 + $0x10] sm:$0xff] }
   0x4   :  { %1406 = vmatprep.subr.msk.mxu0 %vm79_vm0, %v64_v3  ;;  %1412 = vmatprep.subr.msk.mxu1 %vm79_vm0, %v65_v4  ;;  %v281_v13 = vld [vmem:[%s2228_s4 + $0x18] sm:$0xff]  ;;  %v280_v16 = vld [vmem:[%s2228_s4 + $0x10] sm:$0xff]  ;;  %v279_v18 = vld [vmem:[%s2228_s4 + $0x8] sm:$0xff] }
   0x5   :  { %1407 = vmatpush1.msk.msra.mxu0 %vm79_vm0, %v32_v0  ;;  %1413 = vmatpush1.msk.msra.mxu1 %vm79_vm0, %v33_v1  ;;  %v285_v14 = vld [vmem:[%s2228_s4 + $0x38] sm:$0xff]  ;;  %v284_v17 = vld [vmem:[%s2228_s4 + $0x30] sm:$0xff]  ;;  %v283_v19 = vld [vmem:[%s2228_s4 + $0x28] sm:$0xff] }
   0x6   :  { %1408 = vmatmul.mubr.msk.f32.vlgmr.msra.gmra.mxu0 %vm66_vm1, %v34_v6  ;;  %1414 = vmatmul.mubr.msk.f32.vlgmr.msra.gmra.mxu1 %vm66_vm1, %v34_v6  ;;  %v37_v15 = vld [vmem:[%s2226_s1 + $0x18] sm:$0xff]  ;;  %v278_v20 = vld [vmem:[%s2228_s4] sm:$0xff]  ;;  %v288_v23 = vld [vmem:[%s2228_s4 + $0x50] sm:$0xff] }
   0x7   :  { %158 = vmatprep.mubr.f32.mxu0 %v1589_v2  ;;  %247 = vmatprep.mubr.f32.mxu1 %v1589_v2  ;;  %v282_v21 = vld [vmem:[%s2228_s4 + $0x20] sm:$0xff]  ;;  %v289_v22 = vld [vmem:[%s2228_s4 + $0x58] sm:$0xff]  ;;  %v287_v24 = vld [vmem:[%s2228_s4 + $0x48] sm:$0xff] }
   0x8   :  { %54 = vperm.xlu0 %1489, %v40_v10   ;;  %44 = vperm.xlu1 %1490, %v38_v11   ;;  %v286_v25 = vld [vmem:[%s2228_s4 + $0x40] sm:$0xff]  ;;  %v267_v63 = vld [vmem:[%s2229_s3 + $0x8] sm:$0xff]  ;;  %v268_v0 = vld [vmem:[%s2229_s3 + $0x10] sm:$0xff] }
   0x9   :  { %v266_v62 = vld [vmem:[%s2229_s3] sm:$0xff]  ;;  %v269_v1 = vld [vmem:[%s2229_s3 + $0x18] sm:$0xff]  ;;  %v271_v4 = vld [vmem:[%s2229_s3 + $0x28] sm:$0xff] }
   0xa   :  { %1409 = vmatmul.mubr.msk.f32.gmra.mxu0 %vm66_vm1, %v35_v9  ;;  %1415 = vmatmul.mubr.msk.f32.gmra.mxu1 %vm66_vm1, %v35_v9  ;;  %v270_v3 = vld [vmem:[%s2229_s3 + $0x20] sm:$0xff]  ;;  %v272_v5 = vld [vmem:[%s2229_s3 + $0x30] sm:$0xff]  ;;  %v273_v6 = vld [vmem:[%s2229_s3 + $0x38] sm:$0xff] }
   0xb   :  { %164 = vmatprep.mubr.f32.mxu0 %v1589_v2  ;;  %253 = vmatprep.mubr.f32.mxu1 %v1589_v2  ;;  %v274_v7 = vld [vmem:[%s2229_s3 + $0x40] sm:$0xff]  ;;  %v275_v8 = vld [vmem:[%s2229_s3 + $0x48] sm:$0xff]  ;;  %v276_v9 = vld [vmem:[%s2229_s3 + $0x50] sm:$0xff] }
   0xc   :  { %307 = vperm.xlu0 %1489, %v281_v13   ;;  %327 = vperm.xlu1 %1490, %v285_v14   ;;  %v277_v10 = vld [vmem:[%s2229_s3 + $0x58] sm:$0xff] }
   0xe   :  { %1410 = vmatmul.mubr.msk.f32.gmra.mxu0 %vm66_vm1, %v36_v12  ;;  %1416 = vmatmul.mubr.msk.f32.gmra.mxu1 %vm66_vm1, %v36_v12 }
   0xf   :  { %170 = vmatprep.mubr.f32.mxu0 %v1589_v2  ;;  %259 = vmatprep.mubr.f32.mxu1 %v1589_v2 }
  0x10   :  { %302 = vperm.xlu0 %1489, %v280_v16   ;;  %322 = vperm.xlu1 %1490, %v284_v17  }
  0x12   :  { %1411 = vmatmul.mubr.msk.f32.gmra.mxu0 %vm66_vm1, %v37_v15  ;;  %1417 = vmatmul.mubr.msk.f32.gmra.mxu1 %vm66_vm1, %v37_v15 }
  0x13   :  { %451 = vmatprep.mubr.f32.mxu0 %v1589_v2  ;;  %588 = vmatprep.mubr.f32.mxu1 %v1589_v2 }
  0x14   :  { %297 = vperm.xlu0 %1489, %v279_v18   ;;  %317 = vperm.xlu1 %1490, %v283_v19  }
  0x18   :  { %292 = vperm.xlu0 %1489, %v278_v20   ;;  %312 = vperm.xlu1 %1490, %v282_v21  }
  0x1c   :  { %347 = vperm.xlu0 %1489, %v289_v22   ;;  %342 = vperm.xlu1 %1490, %v288_v23  }
  0x20   :  { %337 = vperm.xlu0 %1489, %v287_v24   ;;  %332 = vperm.xlu1 %1490, %v286_v25  }
  0x7e   :  { %v60_v36 = vpop.permute.xlu0 %59  ;;  %v50_v41 = vpop.permute.xlu1 %49 }
  0x83   :  { %v55_v46 = vpop.permute.xlu0 %54  ;;  %v45_v55 = vpop.permute.xlu1 %44 }
  0x87   :  { %v1811_v11 = vpop.permute.xlu0 %307  ;;  %v1813_v12 = vpop.permute.xlu1 %327 }
  0x8b   :  { %v1815_v17 = vpop.permute.xlu0 %302  ;;  %v1817_v18 = vpop.permute.xlu1 %322 }
  0x8f   :  { %v1825_v24 = vpop.permute.xlu0 %297  ;;  %v1827_v25 = vpop.permute.xlu1 %317 }
  0xc6   :  { %v154_v26 = vpop.f32.mrf.mxu0  ;;  %v243_v27 = vpop.f32.mrf.mxu1 }
  0xc7   :  { %v155_v60 = vadd.f32 %v154_v26, %v45_v55  ;;  %v244_v61 = vadd.f32 %v243_v27, %v45_v55 }
  0xc8   :  { %v156_v28 = vpop.f32.mrf.mxu0  ;;  %v245_v29 = vpop.f32.mrf.mxu1 }
  0xc9   :  { %v157_v58 = vadd.f32 %v156_v28, %v45_v55  ;;  %v246_v59 = vadd.f32 %v245_v29, %v45_v55 }
  0xca   :  { %v160_v30 = vpop.f32.mrf.mxu0  ;;  %v249_v31 = vpop.f32.mrf.mxu1 }
  0xcb   :  { %v161_v56 = vadd.f32 %v160_v30, %v50_v41  ;;  %v250_v57 = vadd.f32 %v249_v31, %v50_v41 }
  0xcc   :  { %v162_v32 = vpop.f32.mrf.mxu0  ;;  %v251_v33 = vpop.f32.mrf.mxu1 }
  0xcd   :  { %v163_v53 = vadd.f32 %v162_v32, %v50_v41  ;;  %v252_v54 = vadd.f32 %v251_v33, %v50_v41  ;;  %v293_v32 = vpop.permute.xlu0 %292  ;;  %v313_v33 = vpop.permute.xlu1 %312 }
  0xce   :  { %v166_v34 = vpop.f32.mrf.mxu0  ;;  %v255_v35 = vpop.f32.mrf.mxu1 }
  0xcf   :  { %v167_v51 = vadd.f32 %v166_v34, %v55_v46  ;;  %v256_v52 = vadd.f32 %v255_v35, %v55_v46 }
  0xd0   :  { %v168_v37 = vpop.f32.mrf.mxu0  ;;  %v257_v38 = vpop.f32.mrf.mxu1 }
  0xd1   :  { %v169_v49 = vadd.f32 %v168_v37, %v55_v46  ;;  %v258_v50 = vadd.f32 %v257_v38, %v55_v46 }
  0xd2   :  { %v172_v39 = vpop.f32.mrf.mxu0  ;;  %v261_v40 = vpop.f32.mrf.mxu1 }
  0xd3   :  { %v173_v47 = vadd.f32 %v172_v39, %v60_v36  ;;  %v262_v48 = vadd.f32 %v261_v40, %v60_v36 }
  0xd4   :  { %v174_v42 = vpop.f32.mrf.mxu0  ;;  %v263_v43 = vpop.f32.mrf.mxu1 }
  0xd5   :  { %v175_v44 = vadd.f32 %v174_v42, %v60_v36  ;;  %v264_v45 = vadd.f32 %v263_v43, %v60_v36 }
  0xd7   :  { %411 = vmatprep.subr.mxu0 %v175_v44  ;;  %548 = vmatprep.subr.mxu1 %v264_v45 }
  0xd8   :  { %412 = vmatpush1.msra.mxu0 %v173_v47  ;;  %549 = vmatpush1.msra.mxu1 %v262_v48 }
  0xd9   :  { %413 = vmatprep.subr.mxu0 %v169_v49  ;;  %550 = vmatprep.subr.mxu1 %v258_v50 }
  0xda   :  { %414 = vmatpush1.msra.mxu0 %v167_v51  ;;  %551 = vmatpush1.msra.mxu1 %v256_v52 }
  0xdb   :  { %415 = vmatprep.subr.mxu0 %v163_v53  ;;  %552 = vmatprep.subr.mxu1 %v252_v54 }
  0xdc   :  { %416 = vmatpush1.msra.mxu0 %v161_v56  ;;  %553 = vmatpush1.msra.mxu1 %v250_v57 }
  0xdd   :  { %417 = vmatprep.subr.mxu0 %v157_v58  ;;  %554 = vmatprep.subr.mxu1 %v246_v59 }
  0xde   :  { %418 = vmatpush1.msra.mxu0 %v155_v60  ;;  %555 = vmatpush1.msra.mxu1 %v244_v61 }
  0xdf   :  { %1418 = vmatmul.mubr.msk.f32.vlgmr.msra.gmra.mxu0 %vm350_vm2, %v266_v62  ;;  %1430 = vmatmul.mubr.msk.f32.vlgmr.msra.gmra.mxu1 %vm350_vm2, %v266_v62 }
  0xe0   :  { %457 = vmatprep.mubr.f32.mxu0 %v1589_v2  ;;  %594 = vmatprep.mubr.f32.mxu1 %v1589_v2 }
  0xe3   :  { %1419 = vmatmul.mubr.msk.f32.gmra.mxu0 %vm350_vm2, %v267_v63  ;;  %1431 = vmatmul.mubr.msk.f32.gmra.mxu1 %vm350_vm2, %v267_v63 }
  0xe4   :  { %463 = vmatprep.mubr.f32.mxu0 %v1589_v2  ;;  %600 = vmatprep.mubr.f32.mxu1 %v1589_v2 }
  0xe7   :  { %1420 = vmatmul.mubr.msk.f32.gmra.mxu0 %vm350_vm2, %v268_v0  ;;  %1432 = vmatmul.mubr.msk.f32.gmra.mxu1 %vm350_vm2, %v268_v0 }
  0xe8   :  { %469 = vmatprep.mubr.f32.mxu0 %v1589_v2  ;;  %606 = vmatprep.mubr.f32.mxu1 %v1589_v2 }
  0xeb   :  { %1421 = vmatmul.mubr.msk.f32.gmra.mxu0 %vm350_vm2, %v269_v1  ;;  %1433 = vmatmul.mubr.msk.f32.gmra.mxu1 %vm350_vm2, %v269_v1 }
  0xec   :  { %475 = vmatprep.mubr.f32.mxu0 %v1589_v2  ;;  %612 = vmatprep.mubr.f32.mxu1 %v1589_v2 }
  0xef   :  { %1422 = vmatmul.mubr.msk.f32.gmra.mxu0 %vm350_vm2, %v270_v3  ;;  %1434 = vmatmul.mubr.msk.f32.gmra.mxu1 %vm350_vm2, %v270_v3 }
  0xf0   :  { %481 = vmatprep.mubr.f32.mxu0 %v1589_v2  ;;  %618 = vmatprep.mubr.f32.mxu1 %v1589_v2 }
  0xf3   :  { %1423 = vmatmul.mubr.msk.f32.gmra.mxu0 %vm350_vm2, %v271_v4  ;;  %1435 = vmatmul.mubr.msk.f32.gmra.mxu1 %vm350_vm2, %v271_v4 }
  0xf4   :  { %487 = vmatprep.mubr.f32.mxu0 %v1589_v2  ;;  %624 = vmatprep.mubr.f32.mxu1 %v1589_v2 }
  0xf7   :  { %1424 = vmatmul.mubr.msk.f32.gmra.mxu0 %vm350_vm2, %v272_v5  ;;  %1436 = vmatmul.mubr.msk.f32.gmra.mxu1 %vm350_vm2, %v272_v5 }
  0xf8   :  { %493 = vmatprep.mubr.f32.mxu0 %v1589_v2  ;;  %630 = vmatprep.mubr.f32.mxu1 %v1589_v2 }
  0xfb   :  { %1425 = vmatmul.mubr.msk.f32.gmra.mxu0 %vm350_vm2, %v273_v6  ;;  %1437 = vmatmul.mubr.msk.f32.gmra.mxu1 %vm350_vm2, %v273_v6 }
  0xfc   :  { %499 = vmatprep.mubr.f32.mxu0 %v1589_v2  ;;  %636 = vmatprep.mubr.f32.mxu1 %v1589_v2 }
  0xff   :  { %1426 = vmatmul.mubr.msk.f32.gmra.mxu0 %vm350_vm2, %v274_v7  ;;  %1438 = vmatmul.mubr.msk.f32.gmra.mxu1 %vm350_vm2, %v274_v7 }
 0x100   :  { %505 = vmatprep.mubr.f32.mxu0 %v1589_v2  ;;  %642 = vmatprep.mubr.f32.mxu1 %v1589_v2 }
 0x103   :  { %1427 = vmatmul.mubr.msk.f32.gmra.mxu0 %vm350_vm2, %v275_v8  ;;  %1439 = vmatmul.mubr.msk.f32.gmra.mxu1 %vm350_vm2, %v275_v8 }
 0x104   :  { %511 = vmatprep.mubr.f32.mxu0 %v1589_v2  ;;  %648 = vmatprep.mubr.f32.mxu1 %v1589_v2 }
 0x107   :  { %1428 = vmatmul.mubr.msk.f32.gmra.mxu0 %vm350_vm2, %v276_v9  ;;  %1440 = vmatmul.mubr.msk.f32.gmra.mxu1 %vm350_vm2, %v276_v9 }
 0x108   :  { %517 = vmatprep.mubr.f32.mxu0 %v1589_v2  ;;  %654 = vmatprep.mubr.f32.mxu1 %v1589_v2 }
 0x10b   :  { %1429 = vmatmul.mubr.msk.f32.gmra.mxu0 %vm350_vm2, %v277_v10  ;;  %1441 = vmatmul.mubr.msk.f32.gmra.mxu1 %vm350_vm2, %v277_v10 }
 0x19f   :  { %v453_v13 = vpop.f32.mrf.mxu0  ;;  %v590_v14 = vpop.f32.mrf.mxu1 }
 0x1a0   :  { %v454_v36 = vadd.f32 %v453_v13, %v293_v32  ;;  %v591_v37 = vadd.f32 %v590_v14, %v293_v32 }
 0x1a1   :  { %v455_v15 = vpop.f32.mrf.mxu0  ;;  %v592_v16 = vpop.f32.mrf.mxu1 }
 0x1a2   :  { %v456_v40 = vadd.f32 %v455_v15, %v293_v32  ;;  %v593_v41 = vadd.f32 %v592_v16, %v293_v32 }
 0x1a3   :  { %v459_v2 = vpop.f32.mrf.mxu0  ;;  %v596_v19 = vpop.f32.mrf.mxu1 }
 0x1a4   :  { %v1842_v42 = vadd.f32 %v459_v2, %v1825_v24  ;;  %v1845_v49 = vadd.f32 %v596_v19, %v1825_v24 }
 0x1a5   :  { %v461_v20 = vpop.f32.mrf.mxu0  ;;  %v1819_v21 = vpop.f32.mrf.mxu1 }
 0x1a6   :  { %v1848_v50 = vadd.f32 %v461_v20, %v1825_v24 }
 0x1a7   :  { %v1821_v22 = vpop.f32.mrf.mxu0  ;;  %v1823_v23 = vpop.f32.mrf.mxu1 }
 0x1a9   :  { %v1829_v26 = vpop.f32.mrf.mxu0  ;;  %v1831_v27 = vpop.f32.mrf.mxu1 }
 0x1ab   :  { %v1833_v28 = vpop.f32.mrf.mxu0  ;;  %v1835_v29 = vpop.f32.mrf.mxu1 }
 0x1ad   :  { %v1837_v30 = vpop.f32.mrf.mxu0  ;;  %v1839_v31 = vpop.f32.mrf.mxu1 }
 0x1af   :  { %v477_v34 = vpop.f32.mrf.mxu0  ;;  %v614_v35 = vpop.f32.mrf.mxu1 }
 0x1b0   :  { %v478_v38 = vadd.f32 %v477_v34, %v313_v33  ;;  %v615_v39 = vadd.f32 %v614_v35, %v313_v33 }
 0x1b1   :  { %v479_v43 = vpop.f32.mrf.mxu0  ;;  %v616_v44 = vpop.f32.mrf.mxu1 }
 0x1b2   :  { %v661_v45 = vmul.f32 %v478_v38, %v454_v36  ;;  %v789_v46 = vmul.f32 %v591_v37, %v478_v38  ;;  %v725_v47 = vmul.f32 %v615_v39, %v454_v36  ;;  %v853_v48 = vmul.f32 %v615_v39, %v591_v37 }
 0x1b3   :  { %v480_v51 = vadd.f32 %v479_v43, %v313_v33  ;;  %v617_v52 = vadd.f32 %v616_v44, %v313_v33 }
 0x1b4   :  { %v669_v53 = vrot.slane %v661_v45, 4  ;;  %v797_v54 = vrot.slane %v789_v46, 4  ;;  %v733_v55 = vrot.slane %v725_v47, 4  ;;  %v861_v56 = vrot.slane %v853_v48, 4 }
 0x1b5   :  { %v662_v57 = vmul.f32 %v480_v51, %v456_v40  ;;  %v790_v58 = vmul.f32 %v593_v41, %v480_v51  ;;  %v726_v59 = vmul.f32 %v617_v52, %v456_v40  ;;  %v854_v60 = vmul.f32 %v617_v52, %v593_v41 }
 0x1b6   :  { %v670_v61 = vadd.f32 %v669_v53, %v661_v45  ;;  %v798_v62 = vadd.f32 %v797_v54, %v789_v46  ;;  %v734_v63 = vadd.f32 %v733_v55, %v725_v47  ;;  %v862_v0 = vadd.f32 %v861_v56, %v853_v48  ;;  %v483_v45 = vpop.f32.mrf.mxu0 }
 0x1b7   :  { %v675_v1 = vrot.slane %v662_v57, 4  ;;  %v803_v3 = vrot.slane %v790_v58, 4  ;;  %v739_v4 = vrot.slane %v726_v59, 4  ;;  %v867_v5 = vrot.slane %v854_v60, 4 }
 0x1b8   :  { %v671_v6 = vrot.slane %v670_v61, 2  ;;  %v799_v7 = vrot.slane %v798_v62, 2  ;;  %v735_v8 = vrot.slane %v734_v63, 2  ;;  %v863_v9 = vrot.slane %v862_v0, 2 }
 0x1b9   :  { %v676_v10 = vadd.f32 %v675_v1, %v662_v57  ;;  %v804_v13 = vadd.f32 %v803_v3, %v790_v58  ;;  %v740_v14 = vadd.f32 %v739_v4, %v726_v59  ;;  %v868_v15 = vadd.f32 %v867_v5, %v854_v60 }
 0x1ba   :  { %v672_v16 = vadd.f32 %v671_v6, %v670_v61  ;;  %v800_v2 = vadd.f32 %v799_v7, %v798_v62  ;;  %v736_v19 = vadd.f32 %v735_v8, %v734_v63  ;;  %v864_v20 = vadd.f32 %v863_v9, %v862_v0 }
 0x1bb   :  { %v677_v32 = vrot.slane %v676_v10, 2  ;;  %v805_v33 = vrot.slane %v804_v13, 2  ;;  %v741_v34 = vrot.slane %v740_v14, 2  ;;  %v869_v35 = vrot.slane %v868_v15, 2 }
 0x1bc   :  { %v673_v36 = vrot.slane %v672_v16, 1  ;;  %v801_v37 = vrot.slane %v800_v2, 1  ;;  %v737_v38 = vrot.slane %v736_v19, 1  ;;  %v865_v39 = vrot.slane %v864_v20, 1 }
 0x1bd   :  { %v678_v40 = vadd.f32 %v677_v32, %v676_v10  ;;  %v806_v41 = vadd.f32 %v805_v33, %v804_v13  ;;  %v742_v43 = vadd.f32 %v741_v34, %v740_v14  ;;  %v870_v44 = vadd.f32 %v869_v35, %v868_v15 }
 0x1be   :  { %v674_v46 = vadd.f32 %v673_v36, %v672_v16  ;;  %v802_v47 = vadd.f32 %v801_v37, %v800_v2  ;;  %v738_v48 = vadd.f32 %v737_v38, %v736_v19  ;;  %v866_v51 = vadd.f32 %v865_v39, %v864_v20  ;;  %v620_v20 = vpop.f32.mrf.mxu1  ;;  %v485_v38 = vpop.f32.mrf.mxu0 }
 0x1bf   :  { %v679_v52 = vrot.slane %v678_v40, 1  ;;  %v807_v53 = vrot.slane %v806_v41, 1  ;;  %v743_v54 = vrot.slane %v742_v43, 1  ;;  %v871_v55 = vrot.slane %v870_v44, 1 }
 0x1c0   :  { %v717_v56 = vmul.f32 0.17677669, %v674_v46  ;;  %v845_v57 = vmul.f32 0.17677669, %v802_v47  ;;  %v781_v58 = vmul.f32 0.17677669, %v738_v48  ;;  %v484_v59 = vadd.f32 %v483_v45, %v1827_v25  ;;  %v622_v45 = vpop.f32.mrf.mxu1 }
 0x1c1   :  { %v909_v60 = vmul.f32 0.17677669, %v866_v51  ;;  %v680_v61 = vadd.f32 %v679_v52, %v678_v40  ;;  %v808_v62 = vadd.f32 %v807_v53, %v806_v41  ;;  %v744_v63 = vadd.f32 %v743_v54, %v742_v43  ;;  %v489_v51 = vpop.f32.mrf.mxu0 }
 0x1c2   :  { %v917_v0 = vmax.f32 %v717_v56, %v781_v58  ;;  %v872_v1 = vadd.f32 %v871_v55, %v870_v44  ;;  %v663_v3 = vmul.f32 %v484_v59, %v1842_v42  ;;  %v791_v4 = vmul.f32 %v1845_v49, %v484_v59 }
 0x1c3   :  { %v1045_v5 = vmax.f32 %v845_v57, %v909_v60  ;;  %v718_v6 = vmul.f32 0.17677669, %v680_v61  ;;  %v1853_v7 = vmul.f32 0.17677669, %v808_v62  ;;  %v782_v8 = vmul.f32 0.17677669, %v744_v63 }
 0x1c4   :  { %v925_v9 = vsub.f32 %v717_v56, %v917_v0  ;;  %v949_v10 = vsub.f32 %v781_v58, %v917_v0  ;;  %v1855_v13 = vmul.f32 0.17677669, %v872_v1  ;;  %v681_v14 = vrot.slane %v663_v3, 4 }
 0x1c5   :  { %v599_v15 = vadd.f32 %v1819_v21, %v1825_v24  ;;  %v1053_v16 = vsub.f32 %v845_v57, %v1045_v5  ;;  %v918_v2 = vmax.f32 %v718_v6, %v782_v8  ;;  %v809_v19 = vrot.slane %v791_v4, 4 }
 0x1c6   :  { %v933_v32 = vmul.f32 1.442695, %v925_v9  ;;  %v1077_v33 = vsub.f32 %v909_v60, %v1045_v5  ;;  %v1861_v34 = vmax.f32 %v1853_v7, %v1855_v13  ;;  %v682_v35 = vadd.f32 %v681_v14, %v663_v3 }
 0x1c7   :  { %v1865_v36 = vadd.f32 %v1821_v22, %v1815_v17  ;;  %v1869_v37 = vadd.f32 %v1823_v23, %v1815_v17  ;;  %v1873_v21 = vadd.f32 %v1829_v26, %v1815_v17  ;;  %v1877_v24 = vadd.f32 %v1831_v27, %v1815_v17 }
 0x1c8   :  { %v1881_v39 = vadd.f32 %v1833_v28, %v1811_v11  ;;  %v957_v40 = vmul.f32 1.442695, %v949_v10  ;;  %v926_v22 = vsub.f32 %v718_v6, %v918_v2  ;;  %v683_v41 = vrot.slane %v682_v35, 2 }
 0x1c9   :  { %v1885_v23 = vadd.f32 %v1835_v29, %v1811_v11  ;;  %v1061_v43 = vmul.f32 1.442695, %v1053_v16  ;;  %v950_v44 = vsub.f32 %v782_v8, %v918_v2  ;;  %v810_v26 = vadd.f32 %v809_v19, %v791_v4 }
 0x1ca   :  { %1493 = vpow2.f32 %v933_v32  ;;  %v1887_v46 = vmul.f32 1.442695, %v1077_v33  ;;  %v1054_v17 = vsub.f32 %v1853_v7, %v1861_v34  ;;  %v684_v27 = vadd.f32 %v683_v41, %v682_v35 }
 0x1cb   :  { %v1078_v28 = vsub.f32 %v1855_v13, %v1861_v34  ;;  %v811_v47 = vrot.slane %v810_v26, 2  ;;  %v621_v48 = vadd.f32 %v620_v20, %v1827_v25  ;;  %v486_v29 = vadd.f32 %v485_v38, %v1827_v25 }
 0x1cc   :  { %1495 = vpow2.f32 %v957_v40  ;;  %v1895_v52 = vmul.f32 1.442695, %v926_v22  ;;  %v685_v53 = vrot.slane %v684_v27, 1  ;;  %v623_v54 = vadd.f32 %v622_v45, %v1827_v25 }
 0x1cd   :  { %v1898_v55 = vmul.f32 1.442695, %v950_v44  ;;  %v812_v56 = vadd.f32 %v811_v47, %v810_v26  ;;  %v727_v57 = vmul.f32 %v621_v48, %v1842_v42  ;;  %v855_v58 = vmul.f32 %v621_v48, %v1845_v49 }
 0x1ce   :  { %v686_v59 = vadd.f32 %v685_v53, %v684_v27  ;;  %v664_v60 = vmul.f32 %v486_v29, %v1848_v50  ;;  %v792_v61 = vmul.f32 %v599_v15, %v486_v29  ;;  %v490_v62 = vadd.f32 %v489_v51, %v1817_v18 }
 0x1cf   :  { %1497 = vpow2.f32 %v1061_v43  ;;  %v813_v63 = vrot.slane %v812_v56, 1  ;;  %v745_v0 = vrot.slane %v727_v57, 4  ;;  %v873_v1 = vrot.slane %v855_v58, 4 }
 0x1d0   :  { %v1904_v3 = vmul.f32 0.17677669, %v686_v59  ;;  %v687_v25 = vrot.slane %v664_v60, 4  ;;  %v815_v4 = vrot.slane %v792_v61, 4  ;;  %v728_v5 = vmul.f32 %v623_v54, %v1848_v50 }
 0x1d1   :  { %v814_v6 = vadd.f32 %v813_v63, %v812_v56  ;;  %v746_v42 = vadd.f32 %v745_v0, %v727_v57  ;;  %v874_v8 = vadd.f32 %v873_v1, %v855_v58  ;;  %v856_v49 = vmul.f32 %v623_v54, %v599_v15 }
 0x1d2   :  { %v688_v9 = vadd.f32 %v687_v25, %v664_v60  ;;  %v816_v10 = vadd.f32 %v815_v4, %v792_v61  ;;  %v751_v14 = vrot.slane %v728_v5, 4  ;;  %v665_v16 = vmul.f32 %v490_v62, %v1865_v36 }
 0x1d3   :  { %v1908_v2 = vmul.f32 0.17677669, %v814_v6  ;;  %v747_v19 = vrot.slane %v746_v42, 2  ;;  %v875_v20 = vrot.slane %v874_v8, 2  ;;  %v879_v32 = vrot.slane %v856_v49, 4 }
 0x1d4   :  { %v689_v33 = vrot.slane %v688_v9, 2  ;;  %v817_v35 = vrot.slane %v816_v10, 2  ;;  %v752_v38 = vadd.f32 %v751_v14, %v728_v5  ;;  %v693_v40 = vrot.slane %v665_v16, 4 }
 0x1d5   :  { %v748_v22 = vadd.f32 %v747_v19, %v746_v42  ;;  %v876_v50 = vadd.f32 %v875_v20, %v874_v8  ;;  %v880_v41 = vadd.f32 %v879_v32, %v856_v49  ;;  %v793_v43 = vmul.f32 %v1869_v37, %v490_v62  ;;  %v626_v8 = vpop.f32.mrf.mxu1 }
 0x1d6   :  { %v690_v15 = vadd.f32 %v689_v33, %v688_v9  ;;  %v818_v44 = vadd.f32 %v817_v35, %v816_v10  ;;  %v753_v26 = vrot.slane %v752_v38, 2  ;;  %v694_v45 = vadd.f32 %v693_v40, %v665_v16  ;;  %v491_v40 = vpop.f32.mrf.mxu0 }
 0x1d7   :  { %v1911_v27 = vpop.eup %1493  ;;  %v749_v47 = vrot.slane %v748_v22, 1  ;;  %v877_v48 = vrot.slane %v876_v50, 1  ;;  %v881_v29 = vrot.slane %v880_v41, 2  ;;  %v821_v51 = vrot.slane %v793_v43, 4 }
 0x1d8   :  { %v691_v53 = vrot.slane %v690_v15, 1  ;;  %v819_v54 = vrot.slane %v818_v44, 1  ;;  %v754_v56 = vadd.f32 %v753_v26, %v752_v38  ;;  %v695_v57 = vrot.slane %v694_v45, 2 }
 0x1d9   :  { %v1913_v58 = vpop.eup %1495  ;;  %v750_v59 = vadd.f32 %v749_v47, %v748_v22  ;;  %v878_v60 = vadd.f32 %v877_v48, %v876_v50  ;;  %v882_v61 = vadd.f32 %v881_v29, %v880_v41  ;;  %v822_v62 = vadd.f32 %v821_v51, %v793_v43 }
 0x1da   :  { %v1063_v63 = vmul.f32 1.442695, %v1054_v17  ;;  %v692_v0 = vadd.f32 %v691_v53, %v690_v15  ;;  %v755_v1 = vrot.slane %v754_v56, 1  ;;  %v696_v25 = vadd.f32 %v695_v57, %v694_v45 }
 0x1db   :  { %v783_v4 = vmul.f32 0.17677669, %v750_v59  ;;  %v911_v5 = vmul.f32 0.17677669, %v878_v60  ;;  %v883_v6 = vrot.slane %v882_v61, 1  ;;  %v823_v42 = vrot.slane %v822_v62, 2  ;;  %v495_v59 = vpop.f32.mrf.mxu0 }
 0x1dc   :  { %v1918_v49 = vpop.eup %1497  ;;  %v720_v9 = vmul.f32 0.17677669, %v692_v0  ;;  %v820_v10 = vadd.f32 %v819_v54, %v818_v44  ;;  %v756_v14 = vadd.f32 %v755_v1, %v754_v56  ;;  %v697_v16 = vrot.slane %v696_v25, 1  ;;  %v628_v54 = vpop.f32.mrf.mxu1 }
 0x1dd   :  { %1499 = vpow2.f32 %v1887_v46  ;;  %v919_v19 = vmax.f32 %v1904_v3, %v783_v4  ;;  %v1047_v7 = vmax.f32 %v1908_v2, %v911_v5  ;;  %v884_v17 = vadd.f32 %v883_v6, %v882_v61 }
 0x1de   :  { %1501 = vpow2.f32 %v1895_v52  ;;  %v784_v20 = vmul.f32 0.17677669, %v756_v14  ;;  %v824_v32 = vadd.f32 %v823_v42, %v822_v62  ;;  %v627_v33 = vadd.f32 %v626_v8, %v1817_v18 }
 0x1df   :  { %1503 = vpow2.f32 %v1898_v55  ;;  %v1087_v35 = vmul.f32 1.442695, %v1078_v28  ;;  %v927_v38 = vsub.f32 %v1904_v3, %v919_v19  ;;  %v951_v46 = vsub.f32 %v783_v4, %v919_v19 }
 0x1e0   :  { %v1930_v22 = vmul.f32 0.17677669, %v820_v10  ;;  %v1932_v50 = vmul.f32 0.17677669, %v884_v17  ;;  %v920_v41 = vmax.f32 %v720_v9, %v784_v20  ;;  %v698_v52 = vadd.f32 %v697_v16, %v696_v25 }
 0x1e1   :  { %v937_v43 = vmul.f32 1.442695, %v927_v38  ;;  %v1055_v15 = vsub.f32 %v1908_v2, %v1047_v7  ;;  %v1079_v44 = vsub.f32 %v911_v5, %v1047_v7  ;;  %v729_v55 = vmul.f32 %v627_v33, %v1865_v36 }
 0x1e2   :  { %1505 = vpow2.f32 %v1063_v63  ;;  %v961_v26 = vmul.f32 1.442695, %v951_v46  ;;  %v825_v13 = vrot.slane %v824_v32, 1  ;;  %v492_v34 = vadd.f32 %v491_v40, %v1817_v18 }
 0x1e3   :  { %v928_v28 = vsub.f32 %v720_v9, %v920_v41  ;;  %v952_v3 = vsub.f32 %v784_v20, %v920_v41  ;;  %v757_v45 = vrot.slane %v729_v55, 4  ;;  %v857_v47 = vmul.f32 %v627_v33, %v1869_v37 }
 0x1e4   :  { %v1940_v48 = vadd.f32 %v1837_v30, %v1811_v11  ;;  %1507 = vpow2.f32 %v1087_v35  ;;  %v1944_v2 = vmax.f32 %v1930_v22, %v1932_v50  ;;  %v1946_v36 = vmul.f32 0.17677669, %v698_v52 }
 0x1e5   :  { %1509 = vpow2.f32 %v937_v43  ;;  %v1065_v29 = vmul.f32 1.442695, %v1055_v15  ;;  %v1089_v51 = vmul.f32 1.442695, %v1079_v44  ;;  %v758_v53 = vadd.f32 %v757_v45, %v729_v55 }
 0x1e6   :  { %1511 = vpow2.f32 %v961_v26  ;;  %v826_v56 = vadd.f32 %v825_v13, %v824_v32  ;;  %v885_v57 = vrot.slane %v857_v47, 4  ;;  %v666_v37 = vmul.f32 %v492_v34, %v1873_v21 }
 0x1e7   :  { %v939_v30 = vmul.f32 1.442695, %v928_v28  ;;  %v1949_v60 = vmul.f32 1.442695, %v952_v3  ;;  %v759_v61 = vrot.slane %v758_v53, 2  ;;  %v794_v62 = vmul.f32 %v1877_v24, %v492_v34 }
 0x1e8   :  { %v1056_v63 = vsub.f32 %v1930_v22, %v1944_v2  ;;  %v886_v0 = vadd.f32 %v885_v57, %v857_v47  ;;  %v699_v1 = vrot.slane %v666_v37, 4  ;;  %v629_v25 = vadd.f32 %v628_v54, %v1817_v18 }
 0x1e9   :  { %1513 = vpow2.f32 %v1065_v29  ;;  %v760_v4 = vadd.f32 %v759_v61, %v758_v53  ;;  %v827_v5 = vrot.slane %v794_v62, 4  ;;  %v496_v6 = vadd.f32 %v495_v59, %v1813_v12 }
 0x1ea   :  { %v1956_v42 = vpop.eup %1499  ;;  %v1958_v8 = vmul.f32 0.17677669, %v826_v56  ;;  %v887_v9 = vrot.slane %v886_v0, 2  ;;  %v700_v10 = vadd.f32 %v699_v1, %v666_v37  ;;  %v730_v14 = vmul.f32 %v629_v25, %v1873_v21 }
 0x1eb   :  { %v1961_v16 = vpop.eup %1501  ;;  %v761_v19 = vrot.slane %v760_v4, 1  ;;  %v828_v7 = vadd.f32 %v827_v5, %v794_v62  ;;  %v858_v17 = vmul.f32 %v629_v25, %v1877_v24  ;;  %v667_v18 = vmul.f32 %v496_v6, %v1881_v39 }
 0x1ec   :  { %v1965_v20 = vpop.eup %1503  ;;  %v888_v32 = vadd.f32 %v887_v9, %v886_v0  ;;  %v701_v33 = vrot.slane %v700_v10, 2  ;;  %v763_v35 = vrot.slane %v730_v14, 4  ;;  %v795_v38 = vmul.f32 %v1885_v23, %v496_v6  ;;  %v632_v6 = vpop.f32.mrf.mxu1 }
 0x1ed   :  { %v762_v46 = vadd.f32 %v761_v19, %v760_v4  ;;  %v829_v40 = vrot.slane %v828_v7, 2  ;;  %v891_v22 = vrot.slane %v858_v17, 4  ;;  %v705_v41 = vrot.slane %v667_v18, 4 }
 0x1ee   :  { %v889_v21 = vrot.slane %v888_v32, 1  ;;  %v702_v52 = vadd.f32 %v701_v33, %v700_v10  ;;  %v764_v43 = vadd.f32 %v763_v35, %v730_v14  ;;  %v833_v15 = vrot.slane %v795_v38, 4  ;;  %v497_v33 = vpop.f32.mrf.mxu0 }
 0x1ef   :  { %v1968_v44 = vpop.eup %1505  ;;  %v785_v24 = vmul.f32 0.17677669, %v762_v46  ;;  %v830_v55 = vadd.f32 %v829_v40, %v828_v7  ;;  %v892_v26 = vadd.f32 %v891_v22, %v858_v17  ;;  %v706_v13 = vadd.f32 %v705_v41, %v667_v18 }
 0x1f0   :  { %v890_v34 = vadd.f32 %v889_v21, %v888_v32  ;;  %v703_v28 = vrot.slane %v702_v52, 1  ;;  %v765_v3 = vrot.slane %v764_v43, 2  ;;  %v834_v45 = vadd.f32 %v833_v15, %v795_v38 }
 0x1f1   :  { %v1970_v47 = vpop.eup %1507  ;;  %v1080_v29 = vsub.f32 %v1932_v50, %v1944_v2  ;;  %v921_v53 = vmax.f32 %v1946_v36, %v785_v24  ;;  %v893_v54 = vrot.slane %v892_v26, 2  ;;  %v707_v56 = vrot.slane %v706_v13, 2 }
 0x1f2   :  { %v1975_v57 = vpop.eup %1509  ;;  %1515 = vpow2.f32 %v1089_v51  ;;  %v913_v37 = vmul.f32 0.17677669, %v890_v34  ;;  %v766_v59 = vadd.f32 %v765_v3, %v764_v43  ;;  %v835_v61 = vrot.slane %v834_v45, 2 }
 0x1f3   :  { %v1977_v62 = vpop.eup %1511  ;;  %v1067_v0 = vmul.f32 1.442695, %v1056_v63  ;;  %v929_v1 = vsub.f32 %v1946_v36, %v921_v53  ;;  %v831_v25 = vrot.slane %v830_v55, 1  ;;  %v894_v4 = vadd.f32 %v893_v54, %v892_v26 }
 0x1f4   :  { %1517 = vpow2.f32 %v939_v30  ;;  %v1049_v50 = vmax.f32 %v1958_v8, %v913_v37  ;;  %v704_v2 = vadd.f32 %v703_v28, %v702_v52  ;;  %v767_v5 = vrot.slane %v766_v59, 1 }
 0x1f5   :  { %v1983_v9 = vadd.f32 %v1839_v31, %v1811_v11  ;;  %1519 = vpow2.f32 %v1949_v60  ;;  %v1091_v51 = vmul.f32 1.442695, %v1080_v29  ;;  %v708_v10 = vadd.f32 %v707_v56, %v706_v13 }
 0x1f6   :  { %v1986_v14 = vpop.eup %1513  ;;  %v953_v63 = vsub.f32 %v785_v24, %v921_v53  ;;  %v768_v36 = vadd.f32 %v767_v5, %v766_v59  ;;  %v895_v19 = vrot.slane %v894_v4, 1  ;;  %v836_v7 = vadd.f32 %v835_v61, %v834_v45 }
 0x1f7   :  { %v941_v30 = vmul.f32 1.442695, %v929_v1  ;;  %v1057_v17 = vsub.f32 %v1958_v8, %v1049_v50  ;;  %v832_v18 = vadd.f32 %v831_v25, %v830_v55  ;;  %v633_v32 = vadd.f32 %v632_v6, %v1813_v12  ;;  %v634_v8 = vpop.f32.mrf.mxu1 }
 0x1f8   :  { %1521 = vpow2.f32 %v1067_v0  ;;  %v1081_v11 = vsub.f32 %v913_v37, %v1049_v50  ;;  %v722_v31 = vmul.f32 0.17677669, %v704_v2  ;;  %v786_v35 = vmul.f32 0.17677669, %v768_v36 }
 0x1f9   :  { %1523 = vpow2.f32 %v1091_v51  ;;  %v896_v60 = vadd.f32 %v895_v19, %v894_v4  ;;  %v709_v38 = vrot.slane %v708_v10, 1  ;;  %v731_v46 = vmul.f32 %v633_v32, %v1881_v39 }
 0x1fa   :  { %v965_v40 = vmul.f32 1.442695, %v953_v63  ;;  %v837_v22 = vrot.slane %v836_v7, 1  ;;  %v859_v41 = vmul.f32 %v633_v32, %v1885_v23  ;;  %v498_v21 = vadd.f32 %v497_v33, %v1813_v12 }
 0x1fb   :  { %1525 = vpow2.f32 %v941_v30  ;;  %v1069_v52 = vmul.f32 1.442695, %v1057_v17  ;;  %v850_v43 = vmul.f32 0.17677669, %v832_v18  ;;  %v914_v15 = vmul.f32 0.17677669, %v896_v60 }
 0x1fc   :  { %v1093_v24 = vmul.f32 1.442695, %v1081_v11  ;;  %v922_v55 = vmax.f32 %v722_v31, %v786_v35  ;;  %v769_v26 = vrot.slane %v731_v46, 4  ;;  %v897_v13 = vrot.slane %v859_v41, 4 }
 0x1fd   :  { %v710_v34 = vadd.f32 %v709_v38, %v708_v10  ;;  %v668_v28 = vmul.f32 %v498_v21, %v1940_v48  ;;  %v796_v39 = vmul.f32 %v1983_v9, %v498_v21  ;;  %v635_v3 = vadd.f32 %v634_v8, %v1813_v12 }
 0x1fe   :  { %1527 = vpow2.f32 %v965_v40  ;;  %v838_v23 = vadd.f32 %v837_v22, %v836_v7  ;;  %v770_v45 = vadd.f32 %v769_v26, %v731_v46  ;;  %v898_v29 = vadd.f32 %v897_v13, %v859_v41 }
 0x1ff   :  { %v1996_v53 = vpop.eup %1515  ;;  %1529 = vpow2.f32 %v1069_v52  ;;  %v1050_v54 = vmax.f32 %v850_v43, %v914_v15  ;;  %v711_v56 = vrot.slane %v668_v28, 4  ;;  %v839_v37 = vrot.slane %v796_v39, 4 }
 0x200   :  { %v930_v59 = vsub.f32 %v722_v31, %v922_v55  ;;  %v771_v61 = vrot.slane %v770_v45, 2  ;;  %v899_v0 = vrot.slane %v898_v29, 2  ;;  %v732_v1 = vmul.f32 %v635_v3, %v1940_v48 }
 0x201   :  { %v1999_v25 = vpop.eup %1517  ;;  %1531 = vpow2.f32 %v1093_v24  ;;  %v954_v4 = vsub.f32 %v786_v35, %v922_v55  ;;  %v723_v12 = vmul.f32 0.17677669, %v710_v34  ;;  %v712_v50 = vadd.f32 %v711_v56, %v668_v28 }
 0x202   :  { %v2001_v2 = vpop.eup %1519  ;;  %v772_v5 = vadd.f32 %v771_v61, %v770_v45  ;;  %v900_v6 = vadd.f32 %v899_v0, %v898_v29  ;;  %v840_v51 = vadd.f32 %v839_v37, %v796_v39  ;;  %v775_v10 = vrot.slane %v732_v1, 4 }
 0x203   :  { %v1058_v63 = vsub.f32 %v850_v43, %v1050_v54  ;;  %v851_v36 = vmul.f32 0.17677669, %v838_v23  ;;  %v713_v19 = vrot.slane %v712_v50, 2  ;;  %v860_v7 = vmul.f32 %v635_v3, %v1983_v9 }
 0x204   :  { %v943_v30 = vmul.f32 1.442695, %v930_v59  ;;  %v773_v17 = vrot.slane %v772_v5, 1  ;;  %v901_v48 = vrot.slane %v900_v6, 1  ;;  %v841_v18 = vrot.slane %v840_v51, 2 }
 0x205   :  { %v2004_v32 = vpop.eup %1521  ;;  %v1082_v33 = vsub.f32 %v914_v15, %v1050_v54  ;;  %v714_v11 = vadd.f32 %v713_v19, %v712_v50  ;;  %v776_v31 = vadd.f32 %v775_v10, %v732_v1  ;;  %v903_v35 = vrot.slane %v860_v7, 4 }
 0x206   :  { %v2006_v60 = vpop.eup %1523  ;;  %v967_v38 = vmul.f32 1.442695, %v954_v4  ;;  %v774_v46 = vadd.f32 %v773_v17, %v772_v5  ;;  %v902_v40 = vadd.f32 %v901_v48, %v900_v6  ;;  %v842_v22 = vadd.f32 %v841_v18, %v840_v51 }
 0x207   :  { %v1071_v41 = vmul.f32 1.442695, %v1058_v63  ;;  %v715_v21 = vrot.slane %v714_v11, 1  ;;  %v777_v8 = vrot.slane %v776_v31, 2  ;;  %v904_v9 = vadd.f32 %v903_v35, %v860_v7  ;;  %v2018_v63 = vpop.f32.mrf.mxu0 }
 0x208   :  { %v2008_v52 = vpop.eup %1525  ;;  %1533 = vpow2.f32 %v943_v30  ;;  %v787_v43 = vmul.f32 0.17677669, %v774_v46  ;;  %v915_v24 = vmul.f32 0.17677669, %v902_v40  ;;  %v843_v55 = vrot.slane %v842_v22, 1 }
 0x209   :  { %v1095_v15 = vmul.f32 1.442695, %v1082_v33  ;;  %v716_v26 = vadd.f32 %v715_v21, %v714_v11  ;;  %v778_v13 = vadd.f32 %v777_v8, %v776_v31  ;;  %v905_v34 = vrot.slane %v904_v9, 2  ;;  %v2024_v33 = vpop.f32.mrf.mxu0 }
 0x20a   :  { %1535 = vpow2.f32 %v967_v38  ;;  %v923_v28 = vmax.f32 %v723_v12, %v787_v43  ;;  %v1051_v39 = vmax.f32 %v851_v36, %v915_v24  ;;  %v973_v3 = vadd.f32 %v1913_v58, %v1911_v27 }
 0x20b   :  { %v2012_v23 = vpop.eup %1527  ;;  %1537 = vpow2.f32 %v1071_v41  ;;  %v844_v45 = vadd.f32 %v843_v55, %v842_v22  ;;  %v779_v29 = vrot.slane %v778_v13, 1  ;;  %v906_v54 = vadd.f32 %v905_v34, %v904_v9  ;;  %v2032_v9 = vpop.f32.mrf.mxu0 }
 0x20c   :  { %v2014_v56 = vpop.eup %1529  ;;  %v931_v37 = vsub.f32 %v723_v12, %v923_v28  ;;  %v955_v59 = vsub.f32 %v787_v43, %v923_v28  ;;  %v1059_v61 = vsub.f32 %v851_v36, %v1051_v39  ;;  %v1083_v0 = vsub.f32 %v915_v24, %v1051_v39  ;;  %v2020_v12 = vpop.f32.mrf.mxu1 }
 0x20d   :  { %1539 = vpow2.f32 %v1095_v15  ;;  %v724_v1 = vmul.f32 0.17677669, %v716_v26  ;;  %v780_v4 = vadd.f32 %v779_v29, %v778_v13  ;;  %v907_v50 = vrot.slane %v906_v54, 1 }
 0x20e   :  { %v2016_v5 = vpop.eup %1531  ;;  %v945_v6 = vmul.f32 1.442695, %v931_v37  ;;  %v969_v51 = vmul.f32 1.442695, %v955_v59  ;;  %v1073_v10 = vmul.f32 1.442695, %v1059_v61  ;;  %1541 = vrcp.f32 %v973_v3  ;;  %v2028_v46 = vpop.f32.mrf.mxu1 }
 0x20f   :  { %v1097_v19 = vmul.f32 1.442695, %v1083_v0  ;;  %v852_v7 = vmul.f32 0.17677669, %v844_v45  ;;  %v788_v30 = vmul.f32 0.17677669, %v780_v4  ;;  %v908_v17 = vadd.f32 %v907_v50, %v906_v54  ;;  %v509_v3 = vpop.f32.mrf.mxu0 }
 0x210   :  { %1543 = vpow2.f32 %v945_v6  ;;  %v1101_v36 = vadd.f32 %v1956_v42, %v1918_v49  ;;  %v974_v11 = vadd.f32 %v1965_v20, %v1961_v16  ;;  %v1102_v15 = vadd.f32 %v1970_v47, %v1968_v44  ;;  %v644_v26 = vpop.f32.mrf.mxu1 }
 0x211   :  { %1545 = vpow2.f32 %v969_v51  ;;  %v916_v48 = vmul.f32 0.17677669, %v908_v17  ;;  %v924_v18 = vmax.f32 %v724_v1, %v788_v30  ;;  %v975_v34 = vadd.f32 %v1977_v62, %v1975_v57  ;;  %v513_v4 = vpop.f32.mrf.mxu0 }
 0x212   :  { %1547 = vpow2.f32 %v1073_v10  ;;  %v1103_v28 = vadd.f32 %v1996_v53, %v1986_v14  ;;  %v976_v45 = vadd.f32 %v2001_v2, %v1999_v25  ;;  %v646_v54 = vpop.f32.mrf.mxu1  ;;  %v977_v37 = vadd.f32 %v2012_v23, %v2008_v52 }
 0x213   :  { %1549 = vpow2.f32 %v1097_v19  ;;  %v932_v31 = vsub.f32 %v724_v1, %v924_v18  ;;  %v956_v35 = vsub.f32 %v788_v30, %v924_v18  ;;  %v1052_v38 = vmax.f32 %v852_v7, %v916_v48  ;;  %v515_v18 = vpop.f32.mrf.mxu0 }
 0x214   :  { %1551 = vrcp.f32 %v1101_v36  ;;  %v1105_v59 = vadd.f32 %v2016_v5, %v2014_v56  ;;  %v650_v51 = vpop.f32.mrf.mxu1  ;;  %v1104_v17 = vadd.f32 %v2006_v60, %v2004_v32 }
 0x215   :  { %v2030_v40 = vpop.eup %1533  ;;  %v947_v22 = vmul.f32 1.442695, %v932_v31  ;;  %v971_v41 = vmul.f32 1.442695, %v956_v35  ;;  %v1060_v21 = vsub.f32 %v852_v7, %v1052_v38  ;;  %v1084_v8 = vsub.f32 %v916_v48, %v1052_v38  ;;  %v343_v7 = vpop.permute.xlu1 %342 }
 0x216   :  { %1553 = vrcp.f32 %v974_v11  ;;  %v348_v48 = vpop.permute.xlu0 %347  ;;  %v652_v31 = vpop.f32.mrf.mxu1 }
 0x217   :  { %v2034_v43 = vpop.eup %1535  ;;  %1555 = vpow2.f32 %v947_v22  ;;  %v1075_v24 = vmul.f32 1.442695, %v1060_v21  ;;  %v1099_v55 = vmul.f32 1.442695, %v1084_v8  ;;  %v519_v21 = vpop.f32.mrf.mxu0 }
 0x218   :  { %v2038_v13 = vpop.eup %1537  ;;  %1557 = vpow2.f32 %v971_v41  ;;  %v978_v0 = vadd.f32 %v2034_v43, %v2030_v40 }
 0x219   :  { %1559 = vpow2.f32 %v1075_v24  ;;  %v333_v41 = vpop.permute.xlu1 %332 }
 0x21a   :  { %v2044_v39 = vpop.eup %1539  ;;  %1561 = vpow2.f32 %v1099_v55  ;;  %v2083_v55 = vadd.f32 %v2018_v63, %v333_v41 }
 0x21b   :  { %v1542_v29 = vpop.eup %1541  ;;  %1563 = vrcp.f32 %v1102_v15  ;;  %v1106_v50 = vadd.f32 %v2044_v39, %v2038_v13  ;;  %v656_v15 = vpop.f32.mrf.mxu1 }
 0x21c   :  { %1565 = vrcp.f32 %v975_v34  ;;  %2238 = vst [vmem:[#allocation2_spill] sm:$0xff] %v2083_v55 }
 0x21d   :  { %v2052_v61 = vpop.eup %1543  ;;  %1567 = vrcp.f32 %v1103_v28  ;;  %v338_v28 = vpop.permute.xlu0 %337 }
 0x21e   :  { %v2056_v1 = vpop.eup %1545  ;;  %1569 = vrcp.f32 %v976_v45  ;;  %v2086_v45 = vadd.f32 %v2020_v12, %v333_v41  ;;  %v2097_v63 = vadd.f32 %v2032_v9, %v338_v28  ;;  %v2113_v9 = vmul.f32 %v1542_v29, %v1913_v58 }
 0x21f   :  { %v2060_v6 = vpop.eup %1547  ;;  %1571 = vrcp.f32 %v977_v37  ;;  %v979_v10 = vadd.f32 %v2056_v1, %v2052_v61  ;;  %v2089_v37 = vadd.f32 %v2024_v33, %v333_v41  ;;  %v2106_v33 = vadd.f32 %v646_v54, %v338_v28 }
 0x220   :  { %v2064_v19 = vpop.eup %1549  ;;  %1573 = vrcp.f32 %v1105_v59  ;;  %2239 = vst [vmem:[#allocation3_spill] sm:$0xff] %v2086_v45  ;;  %v521_v45 = vpop.f32.mrf.mxu0  ;;  %2243 = vst [vmem:[#allocation7_spill] sm:$0xff] %v2113_v9 }
 0x221   :  { %v2066_v30 = vpop.eup %1551  ;;  %1575 = vrcp.f32 %v978_v0  ;;  %v1107_v36 = vadd.f32 %v2064_v19, %v2060_v6  ;;  %v522_v58 = vadd.f32 %v521_v45, %v348_v48 }
 0x222   :  { %1577 = vrcp.f32 %v1106_v50  ;;  %v2094_v50 = vadd.f32 %v2028_v46, %v333_v41  ;;  %v2110_v46 = vmul.f32 %v2066_v30, %v1918_v49  ;;  %v658_v41 = vpop.f32.mrf.mxu1 }
 0x223   :  { %v1554_v11 = vpop.eup %1553  ;;  %1579 = vrcp.f32 %v979_v10  ;;  %v2099_v10 = vadd.f32 %v644_v26, %v338_v28  ;;  %v651_v26 = vadd.f32 %v650_v51, %v343_v7  ;;  %v659_v9 = vadd.f32 %v658_v41, %v348_v48 }
 0x224   :  { %v2072_v35 = vpop.eup %1555  ;;  %1581 = vrcp.f32 %v1107_v36  ;;  %2240 = vst [vmem:[#allocation4_spill] sm:$0xff] %v2094_v50  ;;  %v2104_v36 = vmul.f32 %v1542_v29, %v1911_v27  ;;  %2242 = vst [vmem:[#allocation6_spill] sm:$0xff] %v2110_v46  ;;  %v2116_v27 = vmul.f32 %v1554_v11, %v1961_v16  ;;  %v2119_v54 = vmul.f32 %v1554_v11, %v1965_v20 }
 0x225   :  { %v2074_v38 = vpop.eup %1557  ;;  %1583 = vrcp.f32 %v1104_v17  ;;  %v2101_v17 = vadd.f32 %v509_v3, %v338_v28  ;;  %v516_v3 = vadd.f32 %v515_v18, %v343_v7  ;;  %v520_v28 = vadd.f32 %v519_v21, %v348_v48 }
 0x226   :  { %v2076_v22 = vpop.eup %1559  ;;  %v980_v8 = vadd.f32 %v2074_v38, %v2072_v35  ;;  %2241 = vst [vmem:[#allocation5_spill] sm:$0xff] %v2104_v36  ;;  %v657_v46 = vadd.f32 %v656_v15, %v348_v48 }
 0x227   :  { %v2080_v24 = vpop.eup %1561 }
 0x228   :  { %v1564_v34 = vpop.eup %1563  ;;  %1585 = vrcp.f32 %v980_v8  ;;  %v1108_v59 = vadd.f32 %v2080_v24, %v2076_v22  ;;  %v514_v8 = vadd.f32 %v513_v4, %v343_v7  ;;  %v653_v4 = vadd.f32 %v652_v31, %v343_v7 }
 0x229   :  { %v1566_v0 = vpop.eup %1565  ;;  %v2124_v51 = vmul.f32 %v1564_v34, %v1968_v44 }
 0x22a   :  { %v1568_v12 = vpop.eup %1567  ;;  %1587 = vrcp.f32 %v1108_v59  ;;  %v991_v15 = vmul.f32 %v1566_v0, %v1975_v57 }
 0x22b   :  { %v1570_v55 = vpop.eup %1569 }
 0x22c   :  { %v1572_v50 = vpop.eup %1571 }
 0x22d   :  { %v1574_v59 = vpop.eup %1573  ;;  %v993_v36 = vmul.f32 %v1572_v50, %v2008_v52  ;;  %v1009_v49 = vmul.f32 %v1572_v50, %v2012_v23  ;;  %v1134_v23 = vmul.f32 %v1564_v34, %v1970_v47 }
 0x22e   :  { %v1576_v29 = vpop.eup %1575  ;;  %v1121_v18 = vmul.f32 %v1574_v59, %v2014_v56  ;;  %v1137_v16 = vmul.f32 %v1574_v59, %v2016_v5 }
 0x22f   :  { %v1578_v20 = vpop.eup %1577  ;;  %v1001_v11 = vmul.f32 %v993_v36, %v514_v8  ;;  %v1017_v7 = vmul.f32 %v1009_v49, %v651_v26  ;;  %v994_v31 = vmul.f32 %v1576_v29, %v2030_v40  ;;  %v1010_v52 = vmul.f32 %v1576_v29, %v2034_v43 }
 0x230   :  { %v1580_v21 = vpop.eup %1579  ;;  %v1122_v44 = vmul.f32 %v1578_v20, %v2038_v13  ;;  %v1138_v45 = vmul.f32 %v1578_v20, %v2044_v39  ;;  %v1129_v50 = vmul.f32 %v1121_v18, %v514_v8  ;;  %v1145_v5 = vmul.f32 %v1137_v16, %v651_v26 }
 0x231   :  { %v1582_v56 = vpop.eup %1581  ;;  %v1002_v48 = vmul.f32 %v994_v31, %v516_v3  ;;  %v1018_v41 = vmul.f32 %v1010_v52, %v653_v4  ;;  %v995_v40 = vmul.f32 %v1580_v21, %v2052_v61  ;;  %v1011_v43 = vmul.f32 %v1580_v21, %v2056_v1 }
 0x232   :  { %v1584_v36 = vpop.eup %1583  ;;  %v1130_v59 = vmul.f32 %v1122_v44, %v516_v3  ;;  %v1146_v49 = vmul.f32 %v1138_v45, %v653_v4  ;;  %v1123_v47 = vmul.f32 %v1582_v56, %v2060_v6  ;;  %v1139_v57 = vmul.f32 %v1582_v56, %v2064_v19 }
 0x233   :  { %v1025_v34 = vadd.f32 %v1017_v7, %v1001_v11  ;;  %v1026_v13 = vadd.f32 %v1018_v41, %v1002_v48  ;;  %v1119_v39 = vmul.f32 %v1568_v12, %v1986_v14  ;;  %v1007_v8 = vmul.f32 %v1566_v0, %v1977_v62 }
 0x234   :  { %v1135_v26 = vmul.f32 %v1568_v12, %v1996_v53  ;;  %v992_v29 = vmul.f32 %v1570_v55, %v1999_v25  ;;  %v1120_v4 = vmul.f32 %v1584_v36, %v2004_v32  ;;  %v1136_v61 = vmul.f32 %v1584_v36, %v2006_v60  ;;  %v2247_v36 = vld [vmem:[#allocation3_spill] sm:$0xff] }
 0x235   :  { %v1586_v3 = vpop.eup %1585  ;;  %v1035_v1 = vadd.f32 %v1026_v13, %v1025_v34  ;;  %v1154_v18 = vadd.f32 %v1146_v49, %v1130_v59  ;;  %v1008_v6 = vmul.f32 %v1570_v55, %v2001_v2  ;;  %v1003_v19 = vmul.f32 %v995_v40, %v520_v28  ;;  %v2249_v40 = vld [vmem:[#allocation7_spill] sm:$0xff] }
 0x236   :  { %v996_v16 = vmul.f32 %v1586_v3, %v2072_v35  ;;  %v1012_v14 = vmul.f32 %v1586_v3, %v2074_v38  ;;  %v1131_v62 = vmul.f32 %v1123_v47, %v520_v28  ;;  %v1019_v0 = vmul.f32 %v1011_v43, %v657_v46  ;;  %v1184_v3 = vld [vmem:[%s2230_s6 + $0x10] sm:$0xff] }
 0x237   :  { %v1588_v20 = vpop.eup %1587  ;;  %v1147_v53 = vmul.f32 %v1139_v57, %v657_v46  ;;  %1036 = vadd.xlane.f32.xlu0 %v1035_v1  ;;  %v1153_v25 = vadd.f32 %v1145_v5, %v1129_v50  ;;  %v1000_v7 = vmul.f32 %v992_v29, %v2101_v17  ;;  %v1128_v2 = vmul.f32 %v1120_v4, %v2101_v17  ;;  %v1183_v29 = vld [vmem:[%s2230_s6 + $0x8] sm:$0xff]  ;;  %v1178_v4 = vld [vmem:[%s2231_s5] sm:$0xff] }
 0x238   :  { %v1004_v12 = vmul.f32 %v996_v16, %v522_v58  ;;  %v1124_v32 = vmul.f32 %v1588_v20, %v2076_v22  ;;  %v1020_v11 = vmul.f32 %v1012_v14, %v659_v9  ;;  %v1140_v60 = vmul.f32 %v1588_v20, %v2080_v24  ;;  %1470 = vmatprep.mubr.msk.f32.mxu0 %vm350_vm2, %v1178_v4  ;;  %v1305_v1 = vld [vmem:[%s2232_s8] sm:$0xff] }
 0x239   :  { %v1144_v35 = vmul.f32 %v1136_v61, %v2106_v33  ;;  %v1163_v55 = vadd.f32 %v1154_v18, %v1153_v25  ;;  %v1016_v38 = vmul.f32 %v1008_v6, %v2106_v33  ;;  %v1133_v52 = vmul.f32 %v2066_v30, %v1956_v42  ;;  %v1182_v61 = vld [vmem:[%s2230_s6] sm:$0xff]  ;;  %v1306_v18 = vld [vmem:[%s2232_s8 + $0x8] sm:$0x3] }
 0x23a   :  { %v1132_v28 = vmul.f32 %v1124_v32, %v522_v58  ;;  %v1148_v31 = vmul.f32 %v1140_v60, %v659_v9  ;;  %v1028_v46 = vadd.f32 %v1020_v11, %v1004_v12  ;;  %v1127_v22 = vmul.f32 %v1119_v39, %v2097_v63  ;;  %v2244_v9 = vld [vmem:[#allocation4_spill] sm:$0xff] }
 0x23b   :  { %v1143_v21 = vmul.f32 %v1135_v26, %v2099_v10  ;;  %1164 = vadd.xlane.f32.xlu0 %v1163_v55  ;;  %v1027_v24 = vadd.f32 %v1019_v0, %v1003_v19  ;;  %v999_v44 = vmul.f32 %v991_v15, %v2097_v63  ;;  %v1015_v17 = vmul.f32 %v1007_v8, %v2099_v10  ;;  %v2245_v63 = vld [vmem:[#allocation2_spill] sm:$0xff]  ;;  %v1185_v26 = vld [vmem:[%s2230_s6 + $0x18] sm:$0xff] }
 0x23c   :  { %v1155_v45 = vadd.f32 %v1147_v53, %v1131_v62  ;;  %v1156_v56 = vadd.f32 %v1148_v31, %v1132_v28  ;;  %v1126_v33 = vmul.f32 %v2124_v51, %v2089_v37  ;;  %v1142_v58 = vmul.f32 %v1134_v23, %v2244_v9  ;;  %v2246_v15 = vld [vmem:[#allocation6_spill] sm:$0xff]  ;;  %v2248_v51 = vld [vmem:[#allocation5_spill] sm:$0xff] }
 0x23d   :  { %v1038_v50 = vadd.f32 %v1028_v46, %v1027_v24  ;;  %v1152_v5 = vadd.f32 %v1144_v35, %v1128_v2  ;;  %v998_v42 = vmul.f32 %v2116_v27, %v2089_v37  ;;  %v1014_v30 = vmul.f32 %v2119_v54, %v2244_v9  ;;  %v1179_v46 = vld [vmem:[%s2231_s5 + $0x8] sm:$0xff] }
 0x23e   :  { %v1166_v48 = vadd.f32 %v1156_v56, %v1155_v45  ;;  %v1024_v41 = vadd.f32 %v1016_v38, %v1000_v7  ;;  %v1125_v10 = vmul.f32 %v2246_v15, %v2245_v63  ;;  %v1141_v59 = vmul.f32 %v1133_v52, %v2247_v36  ;;  %v1180_v52 = vld [vmem:[%s2231_s5 + $0x10] sm:$0xff] }
 0x23f   :  { %1039 = vadd.xlane.f32.xlu0 %v1038_v50  ;;  %v1151_v49 = vadd.f32 %v1143_v21, %v1127_v22  ;;  %v997_v23 = vmul.f32 %v2248_v51, %v2245_v63  ;;  %v1013_v43 = vmul.f32 %v2249_v40, %v2247_v36  ;;  %v1023_v37 = vadd.f32 %v1015_v17, %v999_v44  ;;  %v1181_v22 = vld [vmem:[%s2231_s5 + $0x18] sm:$0xff]  ;;  %v1303_v21 = vld [vmem:[%s2233_s7] sm:$0xff] }
 0x240   :  { %1167 = vadd.xlane.f32.xlu1 %v1166_v48  ;;  %v1150_v47 = vadd.f32 %v1142_v58, %v1126_v33  ;;  %v1022_v57 = vadd.f32 %v1014_v30, %v998_v42  ;;  %v1149_v34 = vadd.f32 %v1141_v59, %v1125_v10  ;;  %1484 = vmatprep.mubr.msk.f32.mxu1 %vm350_vm2, %v1303_v21  ;;  %v1304_v48 = vld [vmem:[%s2233_s7 + $0x8] sm:$0x3] }
 0x241   :  { %v1160_v27 = vadd.f32 %v1152_v5, %v1151_v49  ;;  %v1032_v54 = vadd.f32 %v1024_v41, %v1023_v37  ;;  %v1021_v13 = vadd.f32 %v1013_v43, %v997_v23 }
 0x242   :  { %v1157_v39 = vadd.f32 %v1150_v47, %v1149_v34 }
 0x243   :  { %1161 = vadd.xlane.f32.xlu0 %v1160_v27  ;;  %v1029_v8 = vadd.f32 %v1022_v57, %v1021_v13 }
 0x244   :  { %1033 = vadd.xlane.f32.xlu1 %v1032_v54 }
 0x247   :  { %1158 = vadd.xlane.f32.xlu0 %v1157_v39 }
 0x248   :  { %1030 = vadd.xlane.f32.xlu1 %v1029_v8 }
 0x259   :  { %1203 = vperm.xlu1 %1490, %v1185_v26  }
 0x25d   :  { %1193 = vperm.xlu1 %1490, %v1183_v29   ;;  %1198 = vperm.xlu0 %1489, %v1184_v3  }
 0x261   :  { %1188 = vperm.xlu1 %1490, %v1182_v61   ;;  %1309 = vperm.xlu0 %1489, %v1305_v1  }
 0x265   :  { %1314 = vperm.xlu1 %1490, %v1306_v18  }
 0x2c0   :  { %v1037_v6 = vpop.xlane.xlu0 %1036 }
 0x2c1   :  { %v1043_v53 = vmul.f32 0.00390625, %v1037_v6 }
 0x2c4   :  { %v1165_v19 = vpop.xlane.xlu0 %1164 }
 0x2c5   :  { %v1171_v0 = vmul.f32 0.00390625, %v1165_v19 }
 0x2c7   :  { %v1176_v7 = vsel %vm1173_vm3, %v1043_v53, %v1171_v0 }
 0x2c8   :  { %v1040_v16 = vpop.xlane.xlu0 %1039 }
 0x2c9   :  { %v1168_v14 = vpop.xlane.xlu1 %1167  ;;  %v1044_v20 = vmul.f32 0.00390625, %v1040_v16 }
 0x2ca   :  { %v1172_v62 = vmul.f32 0.00390625, %v1168_v14 }
 0x2cc   :  { %v1177_v25 = vsel %vm1173_vm3, %v1044_v20, %v1172_v62  ;;  %v1162_v12 = vpop.xlane.xlu0 %1161 }
 0x2cd   :  { %v1034_v32 = vpop.xlane.xlu1 %1033  ;;  %1462 = vmatprep.subr.mxu0 %v1177_v25  ;;  %v1170_v11 = vmul.f32 0.00390625, %v1162_v12 }
 0x2ce   :  { %v1042_v60 = vmul.f32 0.00390625, %v1034_v32  ;;  %1463 = vmatpush3.msra.mxu0 %v1177_v25 }
 0x2cf   :  { %1464 = vmatprep.subr.mxu0 %v1176_v7 }
 0x2d0   :  { %1465 = vmatpush3.msra.mxu0 %v1176_v7  ;;  %v1159_v2 = vpop.xlane.xlu0 %1158  ;;  %v1175_v35 = vsel %vm1173_vm3, %v1042_v60, %v1170_v11 }
 0x2d1   :  { %v1031_v55 = vpop.xlane.xlu1 %1030  ;;  %v1169_v38 = vmul.f32 0.00390625, %v1159_v2  ;;  %1466 = vmatprep.subr.mxu0 %v1175_v35 }
 0x2d2   :  { %v1041_v28 = vmul.f32 0.00390625, %v1031_v55  ;;  %1467 = vmatpush3.msra.mxu0 %v1175_v35 }
 0x2d4   :  { %v1174_v31 = vsel %vm1173_vm3, %v1041_v28, %v1169_v38 }
 0x2d5   :  { %1468 = vmatprep.subr.mxu0 %v1174_v31  ;;  %v1204_v24 = vpop.permute.xlu1 %1203 }
 0x2d6   :  { %1469 = vmatpush3.msra.mxu0 %v1174_v31 }
 0x2d7   :  { %1471 = vmatmul.mubr.msk.f32.vlgmr.msra.gmra.mxu0 %vm350_vm2, %v1179_v46 }
 0x2d8   :  { %1473 = vmatprep.mubr.msk.f32.mxu0 %vm350_vm2, %v1180_v52  ;;  %v1199_v9 = vpop.permute.xlu0 %1198 }
 0x2d9   :  { %v1194_v45 = vpop.permute.xlu1 %1193 }
 0x2db   :  { %1474 = vmatmul.mubr.msk.f32.gmra.mxu0 %vm350_vm2, %v1181_v22 }
 0x2dc   :  { %v1310_v10 = vpop.permute.xlu0 %1309 }
 0x2dd   :  { %v1189_v42 = vpop.permute.xlu1 %1188 }
 0x2e1   :  { %v1315_v41 = vpop.permute.xlu1 %1314 }
 0x397   :  { %v1472_v44 = vpop.f32.mrf.mxu0 }
 0x398   :  { %v1290_v5 = vadd.f32 %v1472_v44, %v1194_v45 }
 0x399   :  { %v1284_v17 = vpop.f32.mrf.mxu0 }
 0x39a   :  { %v1285_v30 = vadd.f32 %v1284_v17, %v1189_v42 }
 0x39b   :  { %v1475_v56 = vpop.f32.mrf.mxu0 }
 0x39c   :  { %v1300_v33 = vadd.f32 %v1475_v56, %v1204_v24 }
 0x39d   :  { %v1294_v58 = vpop.f32.mrf.mxu0 }
 0x39e   :  { %v1295_v50 = vadd.f32 %v1294_v58, %v1199_v9  ;;  %1476 = vmatprep.subr.mxu1 %v1300_v33 }
 0x39f   :  { %1477 = vmatpush3.msra.mxu1 %v1300_v33 }
 0x3a0   :  { %1478 = vmatprep.subr.mxu1 %v1295_v50 }
 0x3a1   :  { %1479 = vmatpush3.msra.mxu1 %v1295_v50 }
 0x3a2   :  { %1480 = vmatprep.subr.mxu1 %v1290_v5 }
 0x3a3   :  { %1481 = vmatpush3.msra.mxu1 %v1290_v5 }
 0x3a4   :  { %1482 = vmatprep.subr.mxu1 %v1285_v30 }
 0x3a5   :  { %1483 = vmatpush3.msra.mxu1 %v1285_v30 }
 0x3a6   :  { %1485 = vmatmul.mubr.msk.f32.vlgmr.msra.gmra.mxu1 %vm350_vm2, %v1304_v48 }
 0x466   :  { %v1486_v63 = vpop.f32.mrf.mxu1 }
 0x467   :  { %v1395_v15 = vadd.f32 %v1486_v63, %v1315_v41 }
 0x468   :  { %v1389_v36 = vpop.f32.mrf.mxu1 }
 0x469   :  { %1401 = vst.msk [vmem:[%s2234_s9 + $0x8] sm:$0x3] %vm1400_vm4, %v1395_v15  ;;  %v1390_v59 = vadd.f32 %v1389_v36, %v1310_v10 }
 0x46b   :  { %1399 = vst.msk [vmem:[%s2234_s9] sm:$0xff] %vm1398_vm5, %v1390_v59 }

</bundles_post_ra>
